<compile_context>
chip_gen: v7x
topology: tpu7x:2x2x1
jax: 0.10.0
libtpu: 0.0.40
codegen_flags: <defaults>
</compile_context>

<pallas_src>
import functools

import jax
import jax.numpy as jnp
from jax.experimental import pallas as pl
from jax.experimental.pallas import tpu as pltpu


def _round_up(x, m):
    return (x + m - 1) // m * m


def _sigmoid(x):
    # Exact identity; one EUP transcendental (tanh) instead of exp + divide.
    return 0.5 * (jnp.tanh(0.5 * x) + 1.0)


# ----------------------------------------------------------------------------
# Pallas kernel: halo DMA + merged im2col matmul + LSTM gate math per (b, tile)
# ----------------------------------------------------------------------------
def _convlstm_cell_kernel(xh_hbm, w_ref, peep_ref, c_ref,
                          h_out_ref, c_out_ref,
                          xh_buf, dma_sem, taps_ref,
                          *, K, C_hid, C_pad, T, L_halo, Wp, p, n_tiles):
    # xh_hbm  : (B, C_pad, L_src)   HBM-resident (x||h||1) on the padded flat grid
    # w_ref   : (4*C_hid, K*K*C_pad) merged conv weight, tap-major columns (VMEM)
    # peep_ref: (3, C_hid, 1)        peephole weights i/f/o (f32)
    # c_ref   : (1, C_hid, T)        previous cell state tile (padded grid)
    # outs    : (1, C_hid, T)        new h / new c tiles (padded grid)
    # xh_buf  : (2, C_pad, L_halo)   double-buffered halo windows
    # dma_sem : (2,)                 DMA semaphores
    # taps_ref: (K*K*C_pad, T)       im2col tile (tap-major rows)
    b = pl.program_id(0)
    j = pl.program_id(1)
    off = p * (Wp + 1)
    slot = j % 2

    def halo_copy(tile_idx, slot_idx):
        start = pl.multiple_of(tile_idx * T, 128)
        return pltpu.make_async_copy(
            xh_hbm.at[b, :, pl.ds(start, L_halo)],
            xh_buf.at[slot_idx],
            dma_sem.at[slot_idx])

    # Prime the double buffer at the first tile of every batch row (the j axis is
    # "arbitrary", so the tiles of one batch run in order on a single core).
    @pl.when(j == 0)
    def _():
        halo_copy(j, slot).start()

    # Prefetch the next tile's halo window while this tile computes.
    @pl.when(j + 1 < n_tiles)
    def _():
        nxt = jnp.minimum(j + 1, n_tiles - 1)
        halo_copy(nxt, 1 - slot).start()

    halo_copy(j, slot).wait()

    # Build the merged im2col tile from the VMEM halo window: every conv tap is a
    # constant (compile-time) shift on the flattened padded grid.
    buf = xh_buf.at[slot]
    t = 0
    for dy in range(K):
        for dx in range(K):
            s = off + (dy - p) * Wp + (dx - p)
            taps_ref[t * C_pad:(t + 1) * C_pad, :] = buf[:, s:s + T]
            t += 1

    # One MXU matmul, f32 accumulation; bias already folded in (ones channel).
    A = jnp.dot(w_ref[...], taps_ref[...], preferred_element_type=jnp.float32)

    c_prev = c_ref[0].astype(jnp.float32)                 # (C_hid, T), lane-dense
    peep = peep_ref[...]                                  # (3, C_hid, 1) f32

    ai = A[0 * C_hid:1 * C_hid]
    af = A[1 * C_hid:2 * C_hid]
    ao = A[2 * C_hid:3 * C_hid]
    ag = A[3 * C_hid:4 * C_hid]

    i = _sigmoid(ai + c_prev * peep[0])
    f = _sigmoid(af + c_prev * peep[1])
    # o-gate peephole uses the PREVIOUS cell state, exactly as in the PyTorch
    # ConvLSTMCell.forward being ported.
    o = _sigmoid(ao + c_prev * peep[2])
    g = jnp.tanh(ag)                                      # activation_function == tanh

    new_c = f * c_prev + i * g
    new_h = o * jnp.tanh(new_c)

    c_out_ref[0] = new_c.astype(c_out_ref.dtype)
    h_out_ref[0] = new_h.astype(h_out_ref.dtype)


# ----------------------------------------------------------------------------
# Wrapper: NCHW glue + pallas_call
# ----------------------------------------------------------------------------
def convlstm_cell_pallas(x_nchw, h_nchw, c_nchw, weight, bias, peephole,
                         kernel_size, *, matmul_dtype=None, tile_hw=None):
    # TODO(synk): dilation != 1 and activation_function == 'prelu' not implemented.
    B, C_in, H, W = x_nchw.shape
    C_hid = h_nchw.shape[1]
    K = kernel_size
    p = (K - 1) // 2
    C_tot = C_in + C_hid
    out_dtype = x_nchw.dtype
    mm_dtype = (jnp.dtype(matmul_dtype) if matmul_dtype is not None
                else jnp.dtype(jnp.bfloat16))          # bf16 default (MXU-native)

    # Generation-aware defaults (v7x: 64 MiB VMEM/core; v5e/v6e: 128 MiB).
    try:
        vmem_cap = int(getattr(pltpu.get_tpu_info(), "vmem_capacity_bytes",
                               128 * 1024 * 1024))
    except Exception:
        vmem_cap = 128 * 1024 * 1024
    if tile_hw is None:
        tile_hw = 2048 if vmem_cap >= 100 * 1024 * 1024 else 1024
    vmem_limit = min(64 * 1024 * 1024, max(32 * 1024 * 1024, vmem_cap // 2))

    Hp, Wp = H + 2 * p, W + 2 * p
    HWp = Hp * Wp
    off = p * (Wp + 1)

    # Pad channels to the sublane packing of the matmul dtype and reserve one
    # extra channel that is constant 1.0 so the conv bias folds into the matmul.
    pack = max(8, 32 // mm_dtype.itemsize)
    C_pad = _round_up(C_tot + 1, pack)

    # Spatial tiling: lane-dense tiles (multiple of 128) over the flattened padded
    # grid, plus a halo of `off` columns on each side for the conv taps.
    T = min(_round_up(HWp, 128), _round_up(tile_hw, 128))
    n_tiles = -(-HWp // T)
    L_out = n_tiles * T
    L_halo = _round_up(T + 2 * off, 128)
    L_src = (n_tiles - 1) * T + L_halo

    # (x || h || 1): channel-pad, spatial zero-frame, flatten, frame for halo reads.
    ones = jnp.ones((B, 1, H, W), x_nchw.dtype)
    xh = jnp.concatenate([x_nchw, h_nchw.astype(x_nchw.dtype), ones], axis=1)
    xh = jnp.pad(xh, ((0, 0), (0, C_pad - C_tot - 1), (p, p), (p, p)))
    xh = xh.reshape(B, C_pad, HWp)
    xh = jnp.pad(xh, ((0, 0), (0, 0), (off, L_src - HWp - off)))
    xh = xh.astype(mm_dtype)

    # Merged conv weight (4*C_hid, K*K*C_pad), tap-major columns; bias folded into
    # the ones channel of the centre tap.
    w = jnp.zeros((4 * C_hid, K, K, C_pad), jnp.float32)
    w = w.at[:, :, :, :C_tot].set(
        jnp.transpose(weight, (0, 2, 3, 1)).astype(jnp.float32))
    w = w.at[:, p, p, C_tot].set(bias.astype(jnp.float32))
    w = w.reshape(4 * C_hid, K * K * C_pad).astype(mm_dtype)

    peep = peephole.reshape(3, C_hid, 1).astype(jnp.float32)

    # Previous cell state embedded onto the padded grid (aligned with A's columns).
    c_p = jnp.pad(c_nchw, ((0, 0), (0, 0), (p, p), (p, p))).reshape(B, C_hid, HWp)
    c_p = jnp.pad(c_p, ((0, 0), (0, 0), (0, L_out - HWp)))

    kern = functools.partial(_convlstm_cell_kernel, K=K, C_hid=C_hid, C_pad=C_pad,
                             T=T, L_halo=L_halo, Wp=Wp, p=p, n_tiles=n_tiles)

    mm_b = mm_dtype.itemsize
    out_b = jnp.dtype(out_dtype).itemsize
    cost = pl.CostEstimate(
        flops=2 * B * L_out * (K * K * C_pad) * (4 * C_hid),
        transcendentals=5 * B * L_out * C_hid,
        bytes_accessed=(B * n_tiles * C_pad * L_halo * mm_b
                        + 4 * C_hid * K * K * C_pad * mm_b
                        + 3 * B * C_hid * L_out * out_b))

    h_new, c_new = pl.pallas_call(
        kern,
        out_shape=(jax.ShapeDtypeStruct((B, C_hid, L_out), out_dtype),
                   jax.ShapeDtypeStruct((B, C_hid, L_out), out_dtype)),
        grid_spec=pltpu.PrefetchScalarGridSpec(
            num_scalar_prefetch=0,
            grid=(B, n_tiles),
            in_specs=[
                pl.BlockSpec(memory_space=pl.ANY),                      # xh in HBM
                pl.BlockSpec((4 * C_hid, K * K * C_pad), lambda b_, j_: (0, 0)),
                pl.BlockSpec((3, C_hid, 1), lambda b_, j_: (0, 0, 0)),
                pl.BlockSpec((1, C_hid, T), lambda b_, j_: (b_, 0, j_)),
            ],
            out_specs=(
                pl.BlockSpec((1, C_hid, T), lambda b_, j_: (b_, 0, j_)),
                pl.BlockSpec((1, C_hid, T), lambda b_, j_: (b_, 0, j_)),
            ),
            scratch_shapes=[
                pltpu.VMEM((2, C_pad, L_halo), mm_dtype),   # double-buffered halo
                pltpu.SemaphoreType.DMA((2,)),
                pltpu.VMEM((K * K * C_pad, T), mm_dtype),   # im2col tile
            ]),
        compiler_params=pltpu.CompilerParams(
            dimension_semantics=("parallel", "arbitrary"),
            vmem_limit_bytes=vmem_limit),
        cost_estimate=cost,
    )(xh, w, peep, c_p)

    def crop(y):  # (B, C_hid, L_out) padded-grid -> (B, C_hid, H, W)
        y = y[:, :, :HWp].reshape(B, C_hid, Hp, Wp)
        return y[:, :, p:p + H, p:p + W]

    return crop(h_new), crop(c_new)


def convlstm_forward(x_nchw, states, params, kernel_size, *, matmul_dtype=None):
    """Mirrors ConvLSTM.forward(input, states, batch_size) with tanh activation."""
    B, _, H, W = x_nchw.shape
    C_hid = params["weight"].shape[0] // 4
    if states is None:
        # TODO(synk): bilinear interpolation of learned h0/c0 (state_init='learn'/
        # 'rand') is not implemented; this path assumes state_init='zero'.
        c = jnp.zeros((B, C_hid, H, W), x_nchw.dtype)
        h = jnp.zeros((B, C_hid, H, W), x_nchw.dtype)
    else:
        c, h = states[0], states[1]
    h_new, c_new = convlstm_cell_pallas(
        x_nchw, h, c, params["weight"], params["bias"], params["peephole"],
        kernel_size, matmul_dtype=matmul_dtype)
    output = h_new
    new_states = jnp.stack((c_new, h_new))
    return output, new_states


# ----------------------------------------------------------------------------
# Pure-JAX reference (for correctness check)
# ----------------------------------------------------------------------------
def reference_cell(x, h, c, weight, bias, peep, K):
    p = (K - 1) // 2
    xh = jnp.concatenate([x, h], axis=1)
    A = jax.lax.conv_general_dilated(
        xh, weight, window_strides=(1, 1), padding=[(p, p), (p, p)],
        dimension_numbers=("NCHW", "OIHW", "NCHW"))
    A = A + bias[None, :, None, None]
    ai, af, ao, ag = jnp.split(A, 4, axis=1)
    f = jax.nn.sigmoid(af + c * peep[1][None, :, None, None])
    i = jax.nn.sigmoid(ai + c * peep[0][None, :, None, None])
    g = jnp.tanh(ag)
    o = jax.nn.sigmoid(ao + c * peep[2][None, :, None, None])
    new_c = f * c + i * g
    new_h = o * jnp.tanh(new_c)
    return new_h, new_c


# ----------------------------------------------------------------------------
# Main
# ----------------------------------------------------------------------------
if __name__ == "__main__":
    B, C_in, H, W = 2, 4, 16, 16
    C_hid, K = 32, 3
    C_tot = C_in + C_hid
    dtype = jnp.float32

    key = jax.random.PRNGKey(0)
    k_w, k_x, k_c, k_h, k_p = jax.random.split(key, 5)

    # Deterministic parameter init (synthetic; mirrors module init shapes).
    xavier_std = (2.0 / (C_tot * K * K + C_hid * K * K)) ** 0.5
    weight = jax.random.normal(k_w, (4 * C_hid, C_tot, K, K), dtype) * xavier_std
    bias = jnp.zeros((4 * C_hid,), dtype).at[C_hid:2 * C_hid].set(0.1)  # forget bias
    # Module initializes peephole weights to zero; use non-zero values so the
    # peephole path is actually exercised.
    peephole = jax.random.normal(k_p, (3, C_hid), dtype) * 0.1
    params = {"weight": weight, "bias": bias, "peephole": peephole}

    x = jax.random.normal(k_x, (B, C_in, H, W), dtype)
    c0 = jax.random.normal(k_c, (B, C_hid, H, W), dtype)
    h0 = jax.random.normal(k_h, (B, C_hid, H, W), dtype)
    states = jnp.stack((c0, h0))                       # (2, B, C_hid, H, W)

    h_ref, c_ref = reference_cell(x, h0, c0, weight, bias, peephole, K)

    # f32 matmul operands (debug path): tight correctness check.
    fwd32 = jax.jit(functools.partial(convlstm_forward, kernel_size=K,
                                      matmul_dtype=jnp.float32))
    out32, st32 = jax.block_until_ready(fwd32(x, states, params))
    assert jnp.allclose(out32, h_ref, atol=1e-4, rtol=1e-4), \
        float(jnp.max(jnp.abs(out32 - h_ref)))
    assert jnp.allclose(st32[0], c_ref, atol=1e-4, rtol=1e-4), \
        float(jnp.max(jnp.abs(st32[0] - c_ref)))
    assert jnp.allclose(st32[1], h_ref, atol=1e-4, rtol=1e-4)

    # Default path: bf16 matmul operands, f32 accumulation / gate math: loose check.
    fwd16 = jax.jit(functools.partial(convlstm_forward, kernel_size=K))
    out16, st16 = jax.block_until_ready(fwd16(x, states, params))
    assert jnp.allclose(out16, h_ref, atol=5e-2, rtol=5e-2), \
        float(jnp.max(jnp.abs(out16 - h_ref)))
    assert jnp.allclose(st16[0], c_ref, atol=5e-2, rtol=5e-2), \
        float(jnp.max(jnp.abs(st16[0] - c_ref)))

    print("KERNEL_OK")
</pallas_src>

<mosaic_0001>
module attributes {stable_mosaic.version = 11 : i64} {
  func.func @_convlstm_cell_kernel(%arg0: i32, %arg1: i32, %arg2: memref<2x40x512xf32, #tpu.memory_space<any>>, %arg3: memref<128x360xf32, #tpu.memory_space<vmem>>, %arg4: memref<3x32x1xf32, #tpu.memory_space<vmem>>, %arg5: memref<1x32x384xf32, #tpu.memory_space<vmem>>, %arg6: memref<1x32x384xf32, #tpu.memory_space<vmem>>, %arg7: memref<1x32x384xf32, #tpu.memory_space<vmem>>, %arg8: memref<2x40x512xf32, #tpu.memory_space<vmem>>, %arg9: memref<2x!tpu.dma_semaphore, #tpu.memory_space<semaphore_mem>>, %arg10: memref<360x384xf32, #tpu.memory_space<vmem>>) attributes {dimension_semantics = [#tpu.dimension_semantics<parallel>, #tpu.dimension_semantics<arbitrary>], iteration_bounds = array<i64: 2, 1>, scalar_prefetch = 0 : i64, scratch_operands = 3 : i64, tpu.core_type = #tpu.core_type<tc>, window_params = [{}, {pipeline_mode = #tpu.pipeline_mode<synchronous>, transform_indices = @transform_1, window_bounds = array<i64: 128, 360>}, {pipeline_mode = #tpu.pipeline_mode<synchronous>, transform_indices = @transform_2, window_bounds = array<i64: 3, 32, 1>}, {transform_indices = @transform_3, window_bounds = array<i64: 1, 32, 384>}, {transform_indices = @transform_4, window_bounds = array<i64: 1, 32, 384>}, {transform_indices = @transform_5, window_bounds = array<i64: 1, 32, 384>}]} {
    %c2_i32 = arith.constant 2 : i32
    %c0_i32 = arith.constant 0 : i32
    %0 = arith.cmpi eq, %c2_i32, %c0_i32 : i32
    %c1_i32 = arith.constant 1 : i32
    %1 = arith.select %0, %c1_i32, %c2_i32 : i32
    %2 = arith.remsi %arg1, %1 : i32
    %c0_i32_0 = arith.constant 0 : i32
    %3 = arith.cmpi ne, %2, %c0_i32_0 : i32
    %c0_i32_1 = arith.constant 0 : i32
    %4 = arith.cmpi slt, %2, %c0_i32_1 : i32
    %c0_i32_2 = arith.constant 0 : i32
    %5 = arith.cmpi slt, %1, %c0_i32_2 : i32
    %6 = arith.xori %4, %5 : i1
    %7 = arith.andi %6, %3 : i1
    %8 = arith.addi %2, %1 : i32
    %9 = arith.select %7, %8, %2 : i32
    %c0_i32_3 = arith.constant 0 : i32
    %10 = arith.cmpi eq, %arg1, %c0_i32_3 : i32
    %11 = arith.extui %10 : i1 to i32
    %c0_i32_4 = arith.constant 0 : i32
    %12 = arith.cmpi ne, %11, %c0_i32_4 : i32
    scf.if %12 {
      %c384_i32_73 = arith.constant 384 : i32
      %119 = arith.muli %arg1, %c384_i32_73 : i32
      %120 = tpu.assume_multiple %119, 128 : i32
      %c0_i32_74 = arith.constant 0 : i32
      %121 = tpu.memref_slice %arg2[%arg0, %c0_i32_74, %120] : memref<2x40x512xf32, #tpu.memory_space<any>> -> memref<1x40x512xf32, #tpu.memory_space<any>>
      %122 = tpu.memref_squeeze %121 : memref<1x40x512xf32, #tpu.memory_space<any>> -> memref<40x512xf32, #tpu.memory_space<any>>
      %c0_i32_75 = arith.constant 0 : i32
      %c0_i32_76 = arith.constant 0 : i32
      %123 = tpu.memref_slice %arg8[%9, %c0_i32_75, %c0_i32_76] : memref<2x40x512xf32, #tpu.memory_space<vmem>> -> memref<1x40x512xf32, #tpu.memory_space<vmem>>
      %124 = tpu.memref_squeeze %123 : memref<1x40x512xf32, #tpu.memory_space<vmem>> -> memref<40x512xf32, #tpu.memory_space<vmem>>
      %125 = tpu.memref_slice %arg9[%9] : memref<2x!tpu.dma_semaphore, #tpu.memory_space<semaphore_mem>> -> memref<1x!tpu.dma_semaphore, #tpu.memory_space<semaphore_mem>>
      %126 = tpu.memref_squeeze %125 : memref<1x!tpu.dma_semaphore, #tpu.memory_space<semaphore_mem>> -> memref<!tpu.dma_semaphore, #tpu.memory_space<semaphore_mem>>
      tpu.enqueue_dma source(%122 : memref<40x512xf32, #tpu.memory_space<any>>) target(%124 : memref<40x512xf32, #tpu.memory_space<vmem>>) target_semaphore(%126 : memref<!tpu.dma_semaphore, #tpu.memory_space<semaphore_mem>>)
    } else {
    }
    %c1_i32_5 = arith.constant 1 : i32
    %13 = arith.addi %arg1, %c1_i32_5 : i32
    %c1_i32_6 = arith.constant 1 : i32
    %14 = arith.cmpi slt, %13, %c1_i32_6 : i32
    %15 = arith.extui %14 : i1 to i32
    %c0_i32_7 = arith.constant 0 : i32
    %16 = arith.cmpi ne, %15, %c0_i32_7 : i32
    scf.if %16 {
      %c1_i32_73 = arith.constant 1 : i32
      %119 = arith.addi %arg1, %c1_i32_73 : i32
      %c0_i32_74 = arith.constant 0 : i32
      %120 = arith.minsi %119, %c0_i32_74 : i32
      %c1_i32_75 = arith.constant 1 : i32
      %121 = arith.subi %c1_i32_75, %9 : i32
      %c384_i32_76 = arith.constant 384 : i32
      %122 = arith.muli %120, %c384_i32_76 : i32
      %123 = tpu.assume_multiple %122, 128 : i32
      %c0_i32_77 = arith.constant 0 : i32
      %124 = tpu.memref_slice %arg2[%arg0, %c0_i32_77, %123] : memref<2x40x512xf32, #tpu.memory_space<any>> -> memref<1x40x512xf32, #tpu.memory_space<any>>
      %125 = tpu.memref_squeeze %124 : memref<1x40x512xf32, #tpu.memory_space<any>> -> memref<40x512xf32, #tpu.memory_space<any>>
      %c0_i32_78 = arith.constant 0 : i32
      %c0_i32_79 = arith.constant 0 : i32
      %126 = tpu.memref_slice %arg8[%121, %c0_i32_78, %c0_i32_79] : memref<2x40x512xf32, #tpu.memory_space<vmem>> -> memref<1x40x512xf32, #tpu.memory_space<vmem>>
      %127 = tpu.memref_squeeze %126 : memref<1x40x512xf32, #tpu.memory_space<vmem>> -> memref<40x512xf32, #tpu.memory_space<vmem>>
      %128 = tpu.memref_slice %arg9[%121] : memref<2x!tpu.dma_semaphore, #tpu.memory_space<semaphore_mem>> -> memref<1x!tpu.dma_semaphore, #tpu.memory_space<semaphore_mem>>
      %129 = tpu.memref_squeeze %128 : memref<1x!tpu.dma_semaphore, #tpu.memory_space<semaphore_mem>> -> memref<!tpu.dma_semaphore, #tpu.memory_space<semaphore_mem>>
      tpu.enqueue_dma source(%125 : memref<40x512xf32, #tpu.memory_space<any>>) target(%127 : memref<40x512xf32, #tpu.memory_space<vmem>>) target_semaphore(%129 : memref<!tpu.dma_semaphore, #tpu.memory_space<semaphore_mem>>)
    } else {
    }
    %c384_i32 = arith.constant 384 : i32
    %17 = arith.muli %arg1, %c384_i32 : i32
    %18 = tpu.assume_multiple %17, 128 : i32
    %c0_i32_8 = arith.constant 0 : i32
    %19 = tpu.memref_slice %arg2[%arg0, %c0_i32_8, %18] : memref<2x40x512xf32, #tpu.memory_space<any>> -> memref<1x40x512xf32, #tpu.memory_space<any>>
    %20 = tpu.memref_squeeze %19 : memref<1x40x512xf32, #tpu.memory_space<any>> -> memref<40x512xf32, #tpu.memory_space<any>>
    %c0_i32_9 = arith.constant 0 : i32
    %c0_i32_10 = arith.constant 0 : i32
    %21 = tpu.memref_slice %arg8[%9, %c0_i32_9, %c0_i32_10] : memref<2x40x512xf32, #tpu.memory_space<vmem>> -> memref<1x40x512xf32, #tpu.memory_space<vmem>>
    %22 = tpu.memref_squeeze %21 : memref<1x40x512xf32, #tpu.memory_space<vmem>> -> memref<40x512xf32, #tpu.memory_space<vmem>>
    %23 = tpu.memref_slice %arg9[%9] : memref<2x!tpu.dma_semaphore, #tpu.memory_space<semaphore_mem>> -> memref<1x!tpu.dma_semaphore, #tpu.memory_space<semaphore_mem>>
    %24 = tpu.memref_squeeze %23 : memref<1x!tpu.dma_semaphore, #tpu.memory_space<semaphore_mem>> -> memref<!tpu.dma_semaphore, #tpu.memory_space<semaphore_mem>>
    tpu.wait_dma2 semaphore(%24 : memref<!tpu.dma_semaphore, #tpu.memory_space<semaphore_mem>>) src(%20 : memref<40x512xf32, #tpu.memory_space<any>>) dst(%22 : memref<40x512xf32, #tpu.memory_space<vmem>>)
    %c0_i32_11 = arith.constant 0 : i32
    %c0_i32_12 = arith.constant 0 : i32
    %25 = tpu.memref_slice %arg8[%9, %c0_i32_11, %c0_i32_12] : memref<2x40x512xf32, #tpu.memory_space<vmem>> -> memref<1x40x512xf32, #tpu.memory_space<vmem>>
    %26 = tpu.memref_squeeze %25 : memref<1x40x512xf32, #tpu.memory_space<vmem>> -> memref<40x512xf32, #tpu.memory_space<vmem>>
    %c0 = arith.constant 0 : index
    %c0_13 = arith.constant 0 : index
    %27 = vector.load %26[%c0, %c0_13] : memref<40x512xf32, #tpu.memory_space<vmem>>, vector<40x384xf32>
    %c0_14 = arith.constant 0 : index
    %c0_15 = arith.constant 0 : index
    %28 = vector.load %arg10[%c0_14, %c0_15] : memref<360x384xf32, #tpu.memory_space<vmem>>, vector<40x384xf32>
    tpu.vector_store %arg10[%c0_14, %c0_15], %27 {strides = array<i32>} : memref<360x384xf32, #tpu.memory_space<vmem>>, vector<40x384xf32>,
    %c0_i32_16 = arith.constant 0 : i32
    %c0_i32_17 = arith.constant 0 : i32
    %29 = tpu.memref_slice %arg8[%9, %c0_i32_16, %c0_i32_17] : memref<2x40x512xf32, #tpu.memory_space<vmem>> -> memref<1x40x512xf32, #tpu.memory_space<vmem>>
    %30 = tpu.memref_squeeze %29 : memref<1x40x512xf32, #tpu.memory_space<vmem>> -> memref<40x512xf32, #tpu.memory_space<vmem>>
    %c0_18 = arith.constant 0 : index
    %c1 = arith.constant 1 : index
    %31 = vector.load %30[%c0_18, %c1] : memref<40x512xf32, #tpu.memory_space<vmem>>, vector<40x384xf32>
    %c40 = arith.constant 40 : index
    %c0_19 = arith.constant 0 : index
    %32 = vector.load %arg10[%c40, %c0_19] : memref<360x384xf32, #tpu.memory_space<vmem>>, vector<40x384xf32>
    tpu.vector_store %arg10[%c40, %c0_19], %31 {strides = array<i32>} : memref<360x384xf32, #tpu.memory_space<vmem>>, vector<40x384xf32>,
    %c0_i32_20 = arith.constant 0 : i32
    %c0_i32_21 = arith.constant 0 : i32
    %33 = tpu.memref_slice %arg8[%9, %c0_i32_20, %c0_i32_21] : memref<2x40x512xf32, #tpu.memory_space<vmem>> -> memref<1x40x512xf32, #tpu.memory_space<vmem>>
    %34 = tpu.memref_squeeze %33 : memref<1x40x512xf32, #tpu.memory_space<vmem>> -> memref<40x512xf32, #tpu.memory_space<vmem>>
    %c0_22 = arith.constant 0 : index
    %c2 = arith.constant 2 : index
    %35 = vector.load %34[%c0_22, %c2] : memref<40x512xf32, #tpu.memory_space<vmem>>, vector<40x384xf32>
    %c80 = arith.constant 80 : index
    %c0_23 = arith.constant 0 : index
    %36 = vector.load %arg10[%c80, %c0_23] : memref<360x384xf32, #tpu.memory_space<vmem>>, vector<40x384xf32>
    tpu.vector_store %arg10[%c80, %c0_23], %35 {strides = array<i32>} : memref<360x384xf32, #tpu.memory_space<vmem>>, vector<40x384xf32>,
    %c0_i32_24 = arith.constant 0 : i32
    %c0_i32_25 = arith.constant 0 : i32
    %37 = tpu.memref_slice %arg8[%9, %c0_i32_24, %c0_i32_25] : memref<2x40x512xf32, #tpu.memory_space<vmem>> -> memref<1x40x512xf32, #tpu.memory_space<vmem>>
    %38 = tpu.memref_squeeze %37 : memref<1x40x512xf32, #tpu.memory_space<vmem>> -> memref<40x512xf32, #tpu.memory_space<vmem>>
    %c0_26 = arith.constant 0 : index
    %c18 = arith.constant 18 : index
    %39 = vector.load %38[%c0_26, %c18] : memref<40x512xf32, #tpu.memory_space<vmem>>, vector<40x384xf32>
    %c120 = arith.constant 120 : index
    %c0_27 = arith.constant 0 : index
    %40 = vector.load %arg10[%c120, %c0_27] : memref<360x384xf32, #tpu.memory_space<vmem>>, vector<40x384xf32>
    tpu.vector_store %arg10[%c120, %c0_27], %39 {strides = array<i32>} : memref<360x384xf32, #tpu.memory_space<vmem>>, vector<40x384xf32>,
    %c0_i32_28 = arith.constant 0 : i32
    %c0_i32_29 = arith.constant 0 : i32
    %41 = tpu.memref_slice %arg8[%9, %c0_i32_28, %c0_i32_29] : memref<2x40x512xf32, #tpu.memory_space<vmem>> -> memref<1x40x512xf32, #tpu.memory_space<vmem>>
    %42 = tpu.memref_squeeze %41 : memref<1x40x512xf32, #tpu.memory_space<vmem>> -> memref<40x512xf32, #tpu.memory_space<vmem>>
    %c0_30 = arith.constant 0 : index
    %c19 = arith.constant 19 : index
    %43 = vector.load %42[%c0_30, %c19] : memref<40x512xf32, #tpu.memory_space<vmem>>, vector<40x384xf32>
    %c160 = arith.constant 160 : index
    %c0_31 = arith.constant 0 : index
    %44 = vector.load %arg10[%c160, %c0_31] : memref<360x384xf32, #tpu.memory_space<vmem>>, vector<40x384xf32>
    tpu.vector_store %arg10[%c160, %c0_31], %43 {strides = array<i32>} : memref<360x384xf32, #tpu.memory_space<vmem>>, vector<40x384xf32>,
    %c0_i32_32 = arith.constant 0 : i32
    %c0_i32_33 = arith.constant 0 : i32
    %45 = tpu.memref_slice %arg8[%9, %c0_i32_32, %c0_i32_33] : memref<2x40x512xf32, #tpu.memory_space<vmem>> -> memref<1x40x512xf32, #tpu.memory_space<vmem>>
    %46 = tpu.memref_squeeze %45 : memref<1x40x512xf32, #tpu.memory_space<vmem>> -> memref<40x512xf32, #tpu.memory_space<vmem>>
    %c0_34 = arith.constant 0 : index
    %c20 = arith.constant 20 : index
    %47 = vector.load %46[%c0_34, %c20] : memref<40x512xf32, #tpu.memory_space<vmem>>, vector<40x384xf32>
    %c200 = arith.constant 200 : index
    %c0_35 = arith.constant 0 : index
    %48 = vector.load %arg10[%c200, %c0_35] : memref<360x384xf32, #tpu.memory_space<vmem>>, vector<40x384xf32>
    tpu.vector_store %arg10[%c200, %c0_35], %47 {strides = array<i32>} : memref<360x384xf32, #tpu.memory_space<vmem>>, vector<40x384xf32>,
    %c0_i32_36 = arith.constant 0 : i32
    %c0_i32_37 = arith.constant 0 : i32
    %49 = tpu.memref_slice %arg8[%9, %c0_i32_36, %c0_i32_37] : memref<2x40x512xf32, #tpu.memory_space<vmem>> -> memref<1x40x512xf32, #tpu.memory_space<vmem>>
    %50 = tpu.memref_squeeze %49 : memref<1x40x512xf32, #tpu.memory_space<vmem>> -> memref<40x512xf32, #tpu.memory_space<vmem>>
    %c0_38 = arith.constant 0 : index
    %c36 = arith.constant 36 : index
    %51 = vector.load %50[%c0_38, %c36] : memref<40x512xf32, #tpu.memory_space<vmem>>, vector<40x384xf32>
    %c240 = arith.constant 240 : index
    %c0_39 = arith.constant 0 : index
    %52 = vector.load %arg10[%c240, %c0_39] : memref<360x384xf32, #tpu.memory_space<vmem>>, vector<40x384xf32>
    tpu.vector_store %arg10[%c240, %c0_39], %51 {strides = array<i32>} : memref<360x384xf32, #tpu.memory_space<vmem>>, vector<40x384xf32>,
    %c0_i32_40 = arith.constant 0 : i32
    %c0_i32_41 = arith.constant 0 : i32
    %53 = tpu.memref_slice %arg8[%9, %c0_i32_40, %c0_i32_41] : memref<2x40x512xf32, #tpu.memory_space<vmem>> -> memref<1x40x512xf32, #tpu.memory_space<vmem>>
    %54 = tpu.memref_squeeze %53 : memref<1x40x512xf32, #tpu.memory_space<vmem>> -> memref<40x512xf32, #tpu.memory_space<vmem>>
    %c0_42 = arith.constant 0 : index
    %c37 = arith.constant 37 : index
    %55 = vector.load %54[%c0_42, %c37] : memref<40x512xf32, #tpu.memory_space<vmem>>, vector<40x384xf32>
    %c280 = arith.constant 280 : index
    %c0_43 = arith.constant 0 : index
    %56 = vector.load %arg10[%c280, %c0_43] : memref<360x384xf32, #tpu.memory_space<vmem>>, vector<40x384xf32>
    tpu.vector_store %arg10[%c280, %c0_43], %55 {strides = array<i32>} : memref<360x384xf32, #tpu.memory_space<vmem>>, vector<40x384xf32>,
    %c0_i32_44 = arith.constant 0 : i32
    %c0_i32_45 = arith.constant 0 : i32
    %57 = tpu.memref_slice %arg8[%9, %c0_i32_44, %c0_i32_45] : memref<2x40x512xf32, #tpu.memory_space<vmem>> -> memref<1x40x512xf32, #tpu.memory_space<vmem>>
    %58 = tpu.memref_squeeze %57 : memref<1x40x512xf32, #tpu.memory_space<vmem>> -> memref<40x512xf32, #tpu.memory_space<vmem>>
    %c0_46 = arith.constant 0 : index
    %c38 = arith.constant 38 : index
    %59 = vector.load %58[%c0_46, %c38] : memref<40x512xf32, #tpu.memory_space<vmem>>, vector<40x384xf32>
    %c320 = arith.constant 320 : index
    %c0_47 = arith.constant 0 : index
    %60 = vector.load %arg10[%c320, %c0_47] : memref<360x384xf32, #tpu.memory_space<vmem>>, vector<40x384xf32>
    tpu.vector_store %arg10[%c320, %c0_47], %59 {strides = array<i32>} : memref<360x384xf32, #tpu.memory_space<vmem>>, vector<40x384xf32>,
    %c0_48 = arith.constant 0 : index
    %c0_49 = arith.constant 0 : index
    %61 = vector.load %arg3[%c0_48, %c0_49] : memref<128x360xf32, #tpu.memory_space<vmem>>, vector<128x360xf32>
    %c0_50 = arith.constant 0 : index
    %c0_51 = arith.constant 0 : index
    %62 = vector.load %arg10[%c0_50, %c0_51] : memref<360x384xf32, #tpu.memory_space<vmem>>, vector<360x384xf32>
    %cst = arith.constant dense<0.000000e+00> : vector<128x384xf32>
    %63 = tpu.matmul %61, %62, %cst {dimension_numbers = #tpu.dot_dimension_numbers<[1], [0], [0], [1], [0, 0, 1, 1], [], []>} : vector<128x360xf32>, vector<360x384xf32>, vector<128x384xf32> -> vector<128x384xf32>
    %c0_52 = arith.constant 0 : index
    %c0_53 = arith.constant 0 : index
    %c0_54 = arith.constant 0 : index
    %64 = vector.load %arg5[%c0_52, %c0_53, %c0_54] : memref<1x32x384xf32, #tpu.memory_space<vmem>>, vector<1x32x384xf32>
    %65 = vector.shape_cast %64 : vector<1x32x384xf32> to vector<32x384xf32>
    %c0_55 = arith.constant 0 : index
    %c0_56 = arith.constant 0 : index
    %c0_57 = arith.constant 0 : index
    %66 = vector.load %arg4[%c0_55, %c0_56, %c0_57] : memref<3x32x1xf32, #tpu.memory_space<vmem>>, vector<3x32x1xf32>
    %67 = vector.extract_strided_slice %63 {offsets = [0, 0], sizes = [32, 384], strides = [1, 1]} : vector<128x384xf32> to vector<32x384xf32>
    %68 = vector.extract_strided_slice %63 {offsets = [32, 0], sizes = [32, 384], strides = [1, 1]} : vector<128x384xf32> to vector<32x384xf32>
    %69 = vector.extract_strided_slice %63 {offsets = [64, 0], sizes = [32, 384], strides = [1, 1]} : vector<128x384xf32> to vector<32x384xf32>
    %70 = vector.extract_strided_slice %63 {offsets = [96, 0], sizes = [32, 384], strides = [1, 1]} : vector<128x384xf32> to vector<32x384xf32>
    %71 = vector.extract_strided_slice %66 {offsets = [0, 0, 0], sizes = [1, 32, 1], strides = [1, 1, 1]} : vector<3x32x1xf32> to vector<1x32x1xf32>
    %72 = vector.shape_cast %71 : vector<1x32x1xf32> to vector<32x1xf32>
    %73 = vector.broadcast %72 : vector<32x1xf32> to vector<32x384xf32>
    %74 = arith.mulf %65, %73 : vector<32x384xf32>
    %75 = arith.addf %67, %74 : vector<32x384xf32>
    %cst_58 = arith.constant 5.000000e-01 : f32
    %76 = vector.broadcast %cst_58 : f32 to vector<32x384xf32>
    %77 = arith.mulf %76, %75 : vector<32x384xf32>
    %78 = math.tanh %77 : vector<32x384xf32>
    %cst_59 = arith.constant 1.000000e+00 : f32
    %79 = vector.broadcast %cst_59 : f32 to vector<32x384xf32>
    %80 = arith.addf %78, %79 : vector<32x384xf32>
    %cst_60 = arith.constant 5.000000e-01 : f32
    %81 = vector.broadcast %cst_60 : f32 to vector<32x384xf32>
    %82 = arith.mulf %81, %80 : vector<32x384xf32>
    %83 = vector.extract_strided_slice %66 {offsets = [1, 0, 0], sizes = [1, 32, 1], strides = [1, 1, 1]} : vector<3x32x1xf32> to vector<1x32x1xf32>
    %84 = vector.shape_cast %83 : vector<1x32x1xf32> to vector<32x1xf32>
    %85 = vector.broadcast %84 : vector<32x1xf32> to vector<32x384xf32>
    %86 = arith.mulf %65, %85 : vector<32x384xf32>
    %87 = arith.addf %68, %86 : vector<32x384xf32>
    %cst_61 = arith.constant 5.000000e-01 : f32
    %88 = vector.broadcast %cst_61 : f32 to vector<32x384xf32>
    %89 = arith.mulf %88, %87 : vector<32x384xf32>
    %90 = math.tanh %89 : vector<32x384xf32>
    %cst_62 = arith.constant 1.000000e+00 : f32
    %91 = vector.broadcast %cst_62 : f32 to vector<32x384xf32>
    %92 = arith.addf %90, %91 : vector<32x384xf32>
    %cst_63 = arith.constant 5.000000e-01 : f32
    %93 = vector.broadcast %cst_63 : f32 to vector<32x384xf32>
    %94 = arith.mulf %93, %92 : vector<32x384xf32>
    %95 = vector.extract_strided_slice %66 {offsets = [2, 0, 0], sizes = [1, 32, 1], strides = [1, 1, 1]} : vector<3x32x1xf32> to vector<1x32x1xf32>
    %96 = vector.shape_cast %95 : vector<1x32x1xf32> to vector<32x1xf32>
    %97 = vector.broadcast %96 : vector<32x1xf32> to vector<32x384xf32>
    %98 = arith.mulf %65, %97 : vector<32x384xf32>
    %99 = arith.addf %69, %98 : vector<32x384xf32>
    %cst_64 = arith.constant 5.000000e-01 : f32
    %100 = vector.broadcast %cst_64 : f32 to vector<32x384xf32>
    %101 = arith.mulf %100, %99 : vector<32x384xf32>
    %102 = math.tanh %101 : vector<32x384xf32>
    %cst_65 = arith.constant 1.000000e+00 : f32
    %103 = vector.broadcast %cst_65 : f32 to vector<32x384xf32>
    %104 = arith.addf %102, %103 : vector<32x384xf32>
    %cst_66 = arith.constant 5.000000e-01 : f32
    %105 = vector.broadcast %cst_66 : f32 to vector<32x384xf32>
    %106 = arith.mulf %105, %104 : vector<32x384xf32>
    %107 = math.tanh %70 : vector<32x384xf32>
    %108 = arith.mulf %94, %65 : vector<32x384xf32>
    %109 = arith.mulf %82, %107 : vector<32x384xf32>
    %110 = arith.addf %108, %109 : vector<32x384xf32>
    %111 = math.tanh %110 : vector<32x384xf32>
    %112 = arith.mulf %106, %111 : vector<32x384xf32>
    %c0_67 = arith.constant 0 : index
    %c0_68 = arith.constant 0 : index
    %c0_69 = arith.constant 0 : index
    %113 = vector.load %arg7[%c0_67, %c0_68, %c0_69] : memref<1x32x384xf32, #tpu.memory_space<vmem>>, vector<1x32x384xf32>
    %114 = vector.shape_cast %113 : vector<1x32x384xf32> to vector<32x384xf32>
    %115 = vector.shape_cast %110 : vector<32x384xf32> to vector<1x32x384xf32>
    tpu.vector_store %arg7[%c0_67, %c0_68, %c0_69], %115 {strides = array<i32>} : memref<1x32x384xf32, #tpu.memory_space<vmem>>, vector<1x32x384xf32>,
    %c0_70 = arith.constant 0 : index
    %c0_71 = arith.constant 0 : index
    %c0_72 = arith.constant 0 : index
    %116 = vector.load %arg6[%c0_70, %c0_71, %c0_72] : memref<1x32x384xf32, #tpu.memory_space<vmem>>, vector<1x32x384xf32>
    %117 = vector.shape_cast %116 : vector<1x32x384xf32> to vector<32x384xf32>
    %118 = vector.shape_cast %112 : vector<32x384xf32> to vector<1x32x384xf32>
    tpu.vector_store %arg6[%c0_70, %c0_71, %c0_72], %118 {strides = array<i32>} : memref<1x32x384xf32, #tpu.memory_space<vmem>>, vector<1x32x384xf32>,
    return
  }
  func.func @transform_1(%arg0: i32, %arg1: i32) -> (i32, i32) {
    %c0_i32 = arith.constant 0 : i32
    %c0_i32_0 = arith.constant 0 : i32
    %c0_i32_1 = arith.constant 0 : i32
    return %c0_i32, %c0_i32_0 : i32, i32
  }
  func.func @transform_2(%arg0: i32, %arg1: i32) -> (i32, i32, i32) {
    %c0_i32 = arith.constant 0 : i32
    %c0_i32_0 = arith.constant 0 : i32
    %c0_i32_1 = arith.constant 0 : i32
    %c0_i32_2 = arith.constant 0 : i32
    return %c0_i32, %c0_i32_0, %c0_i32_1 : i32, i32, i32
  }
  func.func @transform_3(%arg0: i32, %arg1: i32) -> (i32, i32, i32) {
    %c0_i32 = arith.constant 0 : i32
    %c0_i32_0 = arith.constant 0 : i32
    return %arg0, %c0_i32, %arg1 : i32, i32, i32
  }
  func.func @transform_4(%arg0: i32, %arg1: i32) -> (i32, i32, i32) {
    %c0_i32 = arith.constant 0 : i32
    %c0_i32_0 = arith.constant 0 : i32
    return %arg0, %c0_i32, %arg1 : i32, i32, i32
  }
  func.func @transform_5(%arg0: i32, %arg1: i32) -> (i32, i32, i32) {
    %c0_i32 = arith.constant 0 : i32
    %c0_i32_0 = arith.constant 0 : i32
    return %arg0, %c0_i32, %arg1 : i32, i32, i32
  }
}

</mosaic_0001>

<bundles_post_ra>
// kernel: convlstm_forward.1
= control target key start
LH: loop header
LB: loop body
LE: loop exit
PB: predicated region body
PF: predicated region fallthrough
CT: control target
= control target key end

     0   :  { %s5598_s0 = inlined_call_operand.hbm [shape: f32[2,40,512], index: 0, kind: input, shape index: {}]   ;;  %s5599_s1 = inlined_call_operand.hbm [shape: f32[128,360], index: 1, kind: input, shape index: {}]   ;;  %s5600_s2 = inlined_call_operand.hbm [shape: f32[3,32,1], index: 2, kind: input, shape index: {}]   ;;  %s5601_s3 = inlined_call_operand.hbm [shape: f32[2,32,384], index: 3, kind: input, shape index: {}]   ;;  %s5602_s4 = inlined_call_operand.hbm [shape: f32[2,32,384], index: 4, kind: output, shape index: {0}]   ;;  %s5603_s5 = inlined_call_operand.hbm [shape: f32[2,32,384], index: 5, kind: output, shape index: {1}]  }
   0x1   :  { %5648 = sst [smem:[#allocation40_spill]] %s5599_s1 }
   0x2   :  { %11 = vsyncpa [#allocation6], 0 }
   0x3   :  { %12 = vsyncpa [#allocation9], 0 }
   0x4   :  { %13 = vsyncpa [#allocation7], 0 }
   0x5   :  { %15 = vsyncpa [#allocation7 + $0x1], 0 }
   0x6   :  { %16 = vsyncpa [#allocation13], 0 }
   0x7   :  { %18 = vsyncpa [#allocation13 + $0x1], 0  ;;  %s4134_s18 = smov 0   ;;  %s4136_s19 = smov 0  }
   0x8   :  { %s4138_s20 = smov 0   ;;  %s4140_s21 = smov 0  }
   0x9   :  { %s4142_s22 = smov 0   ;;  %s4144_s23 = smov 0  }
   0xa LB: > { %s4165_s24 = sadd.s32 4294967295, %s4080_s23   ;;  %s2844_s25 = sadd.s32 4294967294, %s4080_s23   ;;  %s4080_s23 = sphi %s4144_s23, %s24_s23   ;;  %s4076_s22 = sphi %s4142_s22, %s5739_s22   ;;  %s4072_s21 = sphi %s4140_s21, %s5738_s21   ;;  %s4068_s20 = sphi %s4138_s20, %s5737_s20   ;;  %s4064_s19 = sphi %s4136_s19, %s5736_s19   ;;  %s4060_s18 = sphi %s4134_s18, %s5735_s18  }
   0xb   : > { %p94_p0 = scmp.ne.s32.totalorder %s4068_s20, %s4064_s19  ;;  %p95_p1 = scmp.eq.s32.totalorder %s4080_s23, 0 }
   0xc   : > { %p100_p2 = scmp.ne.s32.totalorder %s4064_s19, %s4060_s18  ;;  %p5604_p3 = scmp.eq.s32.totalorder %s4165_s24, 0 }
   0xd   : > { %p126_p4 = scmp.eq.s32.totalorder %s4165_s24, 1  ;;  %p4175_p5 = por %p95_p1, %p94_p0 }
   0xe   : > { %p132_p6 = scmp.eq.s32.totalorder %s2844_s25, 1  ;;  %p4181_p7 = por %p5604_p3, %p100_p2 }
   0xf   : > { %p4185_p8 = por %p126_p4, %p94_p0  ;;  %p2845_p10 = scmp.ge.s32.totalorder %s4080_s23, 1 }
  0x10   : > { %s5650_s27 = scalar_select %p4181_p7, 1, 0 }
  0x11   : > { %s5651_s28 = scalar_select %p4185_p8, 1, 0 }
  0x12   : > { %p4189_p9 = por %p132_p6, %p100_p2  ;;  %p167_p11 = scmp.lt.s32.totalorder %s4080_s23, 3 }
  0x13   : > { %s4082_s6 = smov [#allocation5]   ;;  %p3283_p1 = scmp.lt.s32.totalorder %s4080_s23, 2 }
  0x14   : > { %s5652_s29 = scalar_select %p4189_p9, 1, 0 }
  0x15   : > { %p4195_p12 = pnand %p2845_p10, %p167_p11  ;;  %s179_s7 = sshll.u32 %s4082_s6, 4  ;;  %s4199_s7 = int_to_ptr.vmem [resolvable:$true] %s179_s7 }
  0x16   : > { %5653 = sst [smem:[#allocation26_spill]] %s5652_s29  ;;  %s4083_s9 = smov [#allocation8]  }
  0x17   : > { %s5654_s30 = scalar_select %p4195_p12, 1, 0 }
  0x18   : > { %p3263_p13 = pneg %p4195_p12  ;;  %s192_s10 = sshll.u32 %s4083_s9, 4  ;;  %s4217_s10 = int_to_ptr.vmem [resolvable:$true] %s192_s10 }
  0x19   : > { %p4213_p4 = pnand %p3283_p1, %p4175_p5  ;;  %s5657_s1 = sld [smem:[#allocation40_spill]] }
  0x1a   : > { %p4207_p2 = pnand %p3263_p13, %p5604_p3 }
  0x1c   : > { %p3848_p10 = pneg %p4207_p2 }
  0x1f   : > { %s3846_s14 = scalar_lea.hbm %s5657_s1, 6144 }
  0x20   : > { %p3847_p6 = scmp.ne.s32.totalorder %s5657_s1, %s3846_s14  ;;  %p3853_p5 = scmp.lt.u32.totalorder %s3846_s14, %s5657_s1 }
  0x22   : > { %p3849_p11 = pnand %p3848_p10, %p3847_p6 }
  0x24   : > { %p3850_p13 = pneg %p3849_p11 }
  0x26   : > { %p3855_p1 = pnand %p3853_p5, %p3850_p13 }
  0x28   : > { %3858 = shalt.err (!%p3855_p1)
}
  0x29   : > { %s3859_s26 = scalar_lea.vmem %s4199_s7, 6144  ;;  %p3867_p8 = scmp.lt.s32.totalorder %s4199_s7, %s4199_s7 }
  0x2a   : > { %p3860_p0 = scmp.ne.s32.totalorder %s4199_s7, %s3859_s26  ;;  %p3868_p6 = scmp.lt.s32.totalorder %s3859_s26, %s3859_s26 }
  0x2c   : > { %p3862_p3 = pnand %p3860_p0, %p3848_p10  ;;  %p3869_p11 = por %p3868_p6, %p3867_p8 }
  0x2e   : > { %p3863_p9 = pneg %p3862_p3 }
  0x30   : > { %p3870_p7 = pnand %p3869_p11, %p3863_p9 }
  0x32   : > { %3873 = shalt.err (!%p3870_p7)
}
  0x33   : > { %s5608_s6 = smov 384   ;;  %s5609_s9 = smov 24  }
  0x34   : > { %3266 = dma.hbm_to_vmem [thread:$0]  (!%p4207_p2), %s5657_s1, 6144, %s4199_s7, [#allocation6], %s5608_s6, %s5608_s6, %s5609_s9  }
  0x35   : > { %s3874_s16 = scalar_lea.hbm %s5600_s2, 1536 }
  0x36   : > { %p3875_p3 = scmp.ne.s32.totalorder %s5600_s2, %s3874_s16  ;;  %p3881_p9 = scmp.lt.u32.totalorder %s3874_s16, %s5600_s2 }
  0x38   : > { %p3877_p7 = pnand %p3875_p3, %p3848_p10 }
  0x3a   : > { %p3878_p8 = pneg %p3877_p7 }
  0x3c   : > { %p3883_p0 = pnand %p3881_p9, %p3878_p8 }
  0x3e   : > { %3886 = shalt.err (!%p3883_p0)
}
  0x3f   : > { %s3887_s7 = scalar_lea.vmem %s4217_s10, 1536  ;;  %p3895_p6 = scmp.lt.s32.totalorder %s4217_s10, %s4217_s10 }
  0x40   : > { %p3888_p13 = scmp.ne.s32.totalorder %s4217_s10, %s3887_s7  ;;  %p3896_p11 = scmp.lt.s32.totalorder %s3887_s7, %s3887_s7 }
  0x42   : > { %p3890_p5 = pnand %p3888_p13, %p3848_p10  ;;  %p3897_p3 = por %p3896_p11, %p3895_p6 }
  0x44   : > { %p3891_p1 = pneg %p3890_p5 }
  0x46   : > { %p3898_p7 = pnand %p3897_p3, %p3891_p1 }
  0x48   : > { %3901 = shalt.err (!%p3898_p7)
}
  0x49   : > { %s4086_s29 = smov 128   ;;  %s4087_s12 = smov 8  }
  0x4a   : > { %3269 = dma.hbm_to_vmem [thread:$0]  (!%p4207_p2), %s5600_s2, 1536, %s4217_s10, [#allocation9], %s4086_s29, %s4086_s29, %s4087_s12  }
  0x4b   : > { %s87_s15 = sadd.s32 1, %s4068_s20  ;;  %s206_s16 = sand.u32 1, %s4080_s23  }
  0x4c   : > { %s36_s17 = sadd.s32 1, %s4076_s22  ;;  %s208_s25 = sand.u32 1, %s4068_s20  }
  0x4d   : > { %p38_p10 = scmp.ge.s32.totalorder %s36_s17, 2  ;;  %s3244_s26 = smul.u32 96, %s208_s25 }
  0x4e   : > { %s3245_s7 = smul.u32 1536, %s4076_s22  ;;  %s4294_s14 = scalar_lea.sflag [#allocation6], %s206_s16 }
  0x4f   : > { %s5741_s17 = smov (%p38_p10, %s36_s17), 0  ;;  %s210_s29 = scalar_lea.vmem [#allocation10], %s3244_s26 }
  0x50   : > { %s4284_s8 = scalar_lea.hbm %s5601_s3, %s3245_s7  ;;  %s82_s10 = ssub.s32 %s4076_s22, %s5741_s17 }
  0x51   : > { %s219_s12 = sshll.u32 %s210_s29, 4  ;;  %p4288_p2 = scmp.eq.s32.totalorder %s82_s10, 0  ;;  %s4292_s12 = int_to_ptr.vmem [resolvable:$true] %s219_s12 }
  0x52   : > { %s3902_s25 = scalar_lea.hbm %s4284_s8, 1536  ;;  %p3904_p9 = pneg %p4213_p4 }
  0x53   : > { %p3903_p8 = scmp.ne.s32.totalorder %s4284_s8, %s3902_s25  ;;  %s3907_s26 = scalar_lea.hbm %s5601_s3, 3072 }
  0x54   : > { %p3908_p5 = scmp.lt.u32.totalorder %s4284_s8, %s5601_s3  ;;  %p3909_p1 = scmp.lt.u32.totalorder %s3907_s26, %s3902_s25 }
  0x55   : > { %p3905_p0 = pnand %p3904_p9, %p3903_p8  ;;  %p3911_p11 = scmp.lt.u32.totalorder %s3902_s25, %s4284_s8 }
  0x56   : > { %p3910_p6 = por %p3909_p1, %p3908_p5 }
  0x57   : > { %p3906_p13 = pneg %p3905_p0 }
  0x58   : > { %p3912_p3 = por %p3911_p11, %p3910_p6 }
  0x5a   : > { %p3913_p7 = pnand %p3912_p3, %p3906_p13 }
  0x5c   : > { %3916 = shalt.err (!%p3913_p7)
}
  0x5d   : > { %s3917_s16 = scalar_lea.vmem %s4292_s12, 1536  ;;  %s4088_s29 = smov [#allocation10]  }
  0x5e   : > { %p3918_p10 = scmp.ne.s32.totalorder %s4292_s12, %s3917_s16  ;;  %s3922_s6 = sshll.u32 %s4088_s29, 4  ;;  %s3923_s6 = int_to_ptr.vmem [resolvable:$false] %s3922_s6 }
  0x5f   : > { %s3924_s9 = scalar_lea.vmem %s3923_s6, 3072  ;;  %p3925_p12 = scmp.lt.s32.totalorder %s4292_s12, %s3923_s6 }
  0x60   : > { %p3920_p8 = pnand %p3918_p10, %p3904_p9  ;;  %p3926_p5 = scmp.lt.s32.totalorder %s3924_s9, %s3917_s16 }
  0x62   : > { %p3921_p0 = pneg %p3920_p8  ;;  %p3927_p1 = por %p3926_p5, %p3925_p12 }
  0x64   : > { %p3928_p6 = pnand %p3927_p1, %p3921_p0 }
  0x66   : > { %3931 = shalt.err (!%p3928_p6)
}
  0x67   : > { %s5659_s25 = smov 24   ;;  %s5660_s26 = smov 384  }
  0x68   : > { %3273 = dma.hbm_to_vmem [thread:$0]  (!%p4213_p4), %s4284_s8, 1536, %s4292_s12, %s4294_s14, %s5660_s26, %s5660_s26, %s5659_s25  }
  0x69   : > { %s4330_s7 = scalar_select %p4288_p2, %s4068_s20, %s87_s15  }
  0x6a   : > { %p5661_p12 = scmp.ne.s32.totalorder %s5654_s30, 0 }
  0x6c   : > { %231 = sbr.rel (%p5661_p12) target bundleno = 807 (0x327), region = 32 }
  0x73   : > { %p5662_p9 = scmp.eq.s32.totalorder %s4165_s24, 0 }
  0x75   : > { %4037 = dma.done.wait (%p5662_p9), [#allocation6], 6144   ;;  %p5663_p13 = pmov %p5662_p9 }
  0x76   : > { %p5664_p11 = pmov %p5662_p9 }
  0x77   : > { %4039 = vsyncadd (%p5663_p13), [#allocation6], 4294961152 }
  0x78   : > { %4041 = dma.done.wait (%p5664_p11), [#allocation9], 1536   ;;  %p5665_p3 = pmov %p5662_p9 }
  0x79   : > { %s241_s11 = sand.u32 1, %s4165_s24   ;;  %s4344_s15 = sand.u32 1, %s4064_s19  }
  0x7a   : > { %4043 = vsyncadd (%p5665_p3), [#allocation9], 4294965760  ;;  %s4347_s30 = smul.u32 96, %s4344_s15  ;;  %s242_s8 = scalar_lea.sflag [#allocation6], %s241_s11 }
  0x7b   : > { %p5666_p4 = scmp.ne.s32.totalorder %s5650_s27, 0 }
  0x7c   : > { %s4350_s12 = scalar_lea.vmem [#allocation10], %s4347_s30 }
  0x7d   : > { %4045 = dma.done.wait (%p5666_p4), %s242_s8, 1536  }
  0x7e   : > { %4047 = vsyncadd (%p5666_p4), %s242_s8, 4294965760  ;;  %s2893_s13 = smul.u32 2560, %s4072_s21  ;;  %s4089_s14 = smov [#allocation2]  }
  0x7f   : > { %s312_s10 = sshll.u32 %s4089_s14, 4  ;;  %s3934_s26 = scalar_lea.hbm %s5598_s0, 5120  ;;  %s313_s10 = int_to_ptr.vmem [resolvable:$true] %s312_s10 }
  0x80   : > { %s300_s29 = scalar_lea.hbm %s5598_s0, %s2893_s13 }
  0x81   : > { %s3932_s6 = scalar_lea.hbm %s300_s29, 2560  ;;  %p3935_p7 = scmp.lt.u32.totalorder %s300_s29, %s5598_s0 }
  0x82   : > { %p3933_p2 = scmp.ne.s32.totalorder %s300_s29, %s3932_s6  ;;  %p3936_p10 = scmp.lt.u32.totalorder %s3934_s26, %s3932_s6 }
  0x83   : > { %p3938_p0 = scmp.lt.u32.totalorder %s3932_s6, %s300_s29 }
  0x84   : > { %p3937_p8 = por %p3936_p10, %p3935_p7 }
  0x86   : > { %p3939_p5 = por %p3938_p0, %p3937_p8 }
  0x88   : > { %p3940_p1 = pnand %p3939_p5, %p3933_p2 }
  0x8a   : > { %3943 = shalt.err (!%p3940_p1)  }
  0x8b   : > { %s3944_s27 = scalar_lea.vmem %s313_s10, 2560  ;;  %s3948_s8 = scalar_lea.vmem %s313_s10, 5120 }
  0x8c   : > { %p3945_p6 = scmp.ne.s32.totalorder %s313_s10, %s3944_s27  ;;  %p3949_p12 = scmp.lt.s32.totalorder %s313_s10, %s313_s10 }
  0x8d   : > { %p3950_p9 = scmp.lt.s32.totalorder %s3948_s8, %s3944_s27 }
  0x8f   : > { %p3951_p13 = por %p3950_p9, %p3949_p12 }
  0x91   : > { %p3952_p11 = pnand %p3951_p13, %p3945_p6 }
  0x93   : > { %3955 = shalt.err (!%p3952_p11)  }
  0x94   : > { %315 = dma.hbm_to_vmem [thread:$0]  %s300_s29, 2560, %s313_s10, [#allocation3] }
  0x95   : > { %s4367_s13 = scalar_lea.vmem [#allocation11], %s4347_s30  ;;  %s4370_s1 = scalar_lea.vmem [#allocation12], %s4347_s30 }
  0x96   : > { %4048 = dma.done.wait [#allocation3], 2560 }
  0x97   : > { %4049 = vsyncadd [#allocation3], 4294964736  ;;  %v391_v0 = vld [vmem:[#allocation2 + $0x30] sm:$0xff]  ;;  %v394_v1 = vld [vmem:[#allocation2 + $0x48] sm:$0xff]  ;;  %s4090_s14 = smov 127   ;;  %s4091_s30 = smov 92  }
  0x98   : > { %v386_v2 = vld [vmem:[#allocation2 + $0x8] sm:$0xff]  ;;  %v4372_v3 = vpack.i.bf16 %v394_v1, %v391_v0  ;;  %v387_v4 = vld [vmem:[#allocation2 + $0x10] sm:$0xff]  ;;  %v389_v5 = vld [vmem:[#allocation2 + $0x20] sm:$0xff]  ;;  %s4092_s10 = smov 91   ;;  %s4093_s16 = smov 126   ;;  %v5639_v39 = vmov 0.0  }
  0x99   : > { %v395_v6 = vld [vmem:[#allocation2 + $0x50] sm:$0xff]  ;;  %v4374_v7 = vpack.i.bf16 %v387_v4, %v386_v2  ;;  %v385_v8 = vld [vmem:[#allocation2] sm:$0xff]  ;;  %v390_v9 = vld [vmem:[#allocation2 + $0x28] sm:$0xff]  ;;  %s4094_s24 = smov 90   ;;  %s4095_s29 = smov 110   ;;  %1898 = vmatprep.mubr.f32.mxu1 %v5639_v39  ;;  %vm465_vm0 = vcmask 1039360  }
  0x9a   : > { %3365 = vrot.lane.b32.xlu1 %v4372_v3, %s4090_s14  ;;  %v4378_v10 = vpack.i.bf16 %v389_v5, %v395_v6  ;;  %v3054_v11 = vpack.c.bf16 %v390_v9, %v386_v2  ;;  %v4382_v12 = vpack.i.bf16 %v390_v9, %v385_v8  ;;  %v1028_v13 = vld [vmem:[#allocation2 + $0x68] sm:$0xff]  ;;  %v1029_v14 = vld [vmem:[#allocation2 + $0x70] sm:$0xff]  ;;  %v3056_v15 = vpack.c.bf16 %v389_v5, %v385_v8  ;;  %v4384_v16 = vld [vmem:[#allocation2 + $0x40] sm:$0xff]  ;;  %s4097_s6 = smov 109   ;;  %s4098_s9 = smov 108  }
  0x9b   : > { %3355 = vrot.lane.b32.xlu0 %v4374_v7, %s4090_s14  ;;  %v4386_v17 = vld [vmem:[#allocation2 + $0x60] sm:$0xff]  ;;  %v3058_v18 = vpack.c.bf16 %v1028_v13, %v394_v1  ;;  %v4392_v20 = vpack.i.bf16 %v1029_v14, %v1028_v13  ;;  %v4396_v21 = vpack.i.bf16 %v395_v6, %v394_v1  ;;  %v3384_v23 = vpack.i.bf16 %v1028_v13, %v4384_v16  ;;  %v4407_v24 = vld [vmem:[#allocation2 + $0x90] sm:$0xff]  ;;  %v4409_v25 = vld [vmem:[#allocation2 + $0x88] sm:$0xff]  ;;  %s2672_s25 = sshll.u32 %s4370_s1, 4  ;;  %s2639_s8 = scalar_lea.sflag [#allocation13], %s4344_s15  ;;  %s5500_s25 = int_to_ptr.vmem [resolvable:$true] %s2672_s25 }
  0x9c   : > { %3055 = vmatprep.subr.bf16.mxu0 %v3054_v11  ;;  %v3060_v19 = vpack.c.bf16 %v4386_v17, %v4384_v16  ;;  %v4402_v22 = vpack.i.bf16 %v4386_v17, %v4384_v16  ;;  %v3399_v26 = vpack.i.bf16 %v4386_v17, %v4407_v24  ;;  %v3394_v27 = vpack.i.bf16 %v4409_v25, %v1029_v14  ;;  %v4423_v29 = vld [vmem:[#allocation2 + $0x80] sm:$0xff]  ;;  %v4425_v30 = vld [vmem:[#allocation2 + $0x18] sm:$0xff]  ;;  %p5731_p4 = scmp.ne.s32.totalorder %s5651_s28, 0 }
  0x9d   : > { %3057 = vmatpush1.bf16.msra.mxu0 %v3056_v15  ;;  %v4421_v28 = vpack.i.bf16 %v4407_v24, %v4409_v25  ;;  %v3414_v31 = vpack.i.bf16 %v4425_v30, %v4423_v29  ;;  %v4440_v32 = vpack.i.bf16 %v391_v0, %v390_v9  ;;  %v4444_v33 = vpack.i.bf16 %v389_v5, %v385_v8  ;;  %v648_v34 = vld [vmem:[#allocation2 + $0x58] sm:$0xff] }
  0x9e   : > { %3370 = vrot.lane.b32.xlu1 %v4378_v10, %s4090_s14  ;;  %3059 = vmatprep.subr.bf16.mxu0 %v3058_v18  ;;  %v652_v35 = vld [vmem:[#allocation2 + $0x78] sm:$0xff]  ;;  %v3604_v42 = vpack.i.bf16 %v648_v34, %v4423_v29  ;;  %v3634_v58 = vpack.i.bf16 %v4425_v30, %v4384_v16  ;;  %vm1095_vm1 = vcmask 752640   ;;  %vm1221_vm2 = vcmask 744448  }
  0x9f   : > { %3360 = vrot.lane.b32.xlu0 %v4382_v12, %s4090_s14  ;;  %v644_v36 = vld [vmem:[#allocation2 + $0x38] sm:$0xff]  ;;  %v4489_v37 = vpack.i.bf16 %v652_v35, %v648_v34  ;;  %vm591_vm3 = vcmask 1031168   ;;  %vm717_vm4 = vcmask 900096   ;;  %vm1347_vm5 = vcmask 736256  }
  0xa0   : > { %v3549_v38 = vpack.i.bf16 %v644_v36, %v4423_v29  ;;  %v4506_v40 = vld [vmem:[#allocation2 + $0x98] sm:$0xff]  ;;  %v4514_v41 = vpack.i.bf16 %v644_v36, %v4425_v30  ;;  %v4533_v48 = vpack.i.bf16 %v648_v34, %v644_v36  ;;  %vm1576_vm6 = vcmask 850944  }
  0xa1   : > { %3061 = vmatpush1.bf16.msra.mxu0 %v3060_v19  ;;  %v4520_v43 = vpack.i.bf16 %v4506_v40, %v652_v35  ;;  %vm843_vm7 = vcmask 891904   ;;  %vm969_vm8 = vcmask 883712  }
  0xa2   : > { %3380 = vrot.lane.b32.xlu1 %v4392_v20, %s4091_s30 }
  0xa3   : > { %3375 = vrot.lane.b32.xlu0 %v4396_v21, %s4091_s30 }
  0xa6   : > { %3390 = vrot.lane.b32.xlu1 %v4402_v22, %s4091_s30 }
  0xa7   : > { %3385 = vrot.lane.b32.xlu0 %v3384_v23, %s4090_s14 }
  0xaa   : > { %3400 = vrot.lane.b32.xlu1 %v3399_v26, %s4090_s14 }
  0xab   : > { %3395 = vrot.lane.b32.xlu0 %v3394_v27, %s4090_s14 }
  0xae   : > { %3410 = vrot.lane.b32.xlu1 %v4374_v7, %s4092_s10 }
  0xaf   : > { %3405 = vrot.lane.b32.xlu0 %v4421_v28, %s4091_s30 }
  0xb2   : > { %1087 = vrot.lane.b32.xlu1 %v4423_v29, %s4091_s30 }
  0xb3   : > { %3415 = vrot.lane.b32.xlu0 %v3414_v31, %s4090_s14 }
  0xb6   : > { %3425 = vrot.lane.b32.xlu1 %v4374_v7, %s4093_s16 }
  0xb7   : > { %3420 = vrot.lane.b32.xlu0 %v4382_v12, %s4092_s10 }
  0xba   : > { %3435 = vrot.lane.b32.xlu1 %v4372_v3, %s4092_s10 }
  0xbb   : > { %3430 = vrot.lane.b32.xlu0 %v4440_v32, %s4093_s16 }
  0xbe   : > { %3445 = vrot.lane.b32.xlu1 %v4444_v33, %s4093_s16 }
  0xbf   : > { %3440 = vrot.lane.b32.xlu0 %v4378_v10, %s4092_s10 }
  0xc2   : > { %3455 = vrot.lane.b32.xlu1 %v4396_v21, %s4093_s16 }
  0xc3   : > { %3450 = vrot.lane.b32.xlu0 %v3384_v23, %s4092_s10 }
  0xc6   : > { %3465 = vrot.lane.b32.xlu1 %v3394_v27, %s4092_s10 }
  0xc7   : > { %3460 = vrot.lane.b32.xlu0 %v4392_v20, %s4093_s16 }
  0xca   : > { %3475 = vrot.lane.b32.xlu1 %v4402_v22, %s4093_s16 }
  0xcb   : > { %3470 = vrot.lane.b32.xlu0 %v3399_v26, %s4092_s10 }
  0xce   : > { %3480 = vrot.lane.b32.xlu1 %v4421_v28, %s4093_s16 }
  0xcf   : > { %1213 = vrot.lane.b32.xlu0 %v4423_v29, %s4092_s10 }
  0xd2   : > { %3490 = vrot.lane.b32.xlu1 %v4374_v7, %s4094_s24 }
  0xd3   : > { %3485 = vrot.lane.b32.xlu0 %v4374_v7, %s4095_s29 }
  0xd6   : > { %583 = vrot.lane.b32.xlu1 %v4423_v29, %s4093_s16 }
  0xd7   : > { %3495 = vrot.lane.b32.xlu0 %v4440_v32, %s4094_s24 }
  0xda   : > { %3505 = vrot.lane.b32.xlu1 %v4444_v33, %s4094_s24 }
  0xdb   : > { %3500 = vrot.lane.b32.xlu0 %v4382_v12, %s4095_s29 }
  0xde   : > { %3515 = vrot.lane.b32.xlu1 %v4378_v10, %s4095_s29 }
  0xdf   : > { %3510 = vrot.lane.b32.xlu0 %v4372_v3, %s4095_s29 }
  0xe2   : > { %3525 = vrot.lane.b32.xlu1 %v4392_v20, %s4094_s24 }
  0xe3   : > { %3520 = vrot.lane.b32.xlu0 %v4396_v21, %s4094_s24 }
  0xe6   : > { %3535 = vrot.lane.b32.xlu1 %v4402_v22, %s4094_s24 }
  0xe7   : > { %3530 = vrot.lane.b32.xlu0 %v3384_v23, %s4095_s29 }
  0xea   : > { %3545 = vrot.lane.b32.xlu1 %v3399_v26, %s4095_s29 }
  0xeb   : > { %3540 = vrot.lane.b32.xlu0 %v3394_v27, %s4095_s29 }
  0xee   : > { %3555 = vrot.lane.b32.xlu1 %v4489_v37, %s4095_s29 }
  0xef   : > { %3550 = vrot.lane.b32.xlu0 %v3549_v38, %s4095_s29 }
  0xf2   : > { %1343 = vrot.lane.b32.xlu1 %v4407_v24, %s4094_s24 }
  0xf3   : > { %1341 = vrot.lane.b32.xlu0 %v4409_v25, %s4094_s24 }
  0xf6   : > { %3560 = vrot.lane.b32.xlu1 %v4374_v7, %s4097_s6 }
  0xf7   : > { %1339 = vrot.lane.b32.xlu0 %v4423_v29, %s4094_s24 }
  0xfa   : > { %3570 = vrot.lane.b32.xlu1 %v4444_v33, %s4097_s6 }
  0xfb   : > { %3565 = vrot.lane.b32.xlu0 %v4440_v32, %s4097_s6 }
  0xfe   : > { %3575 = vrot.lane.b32.xlu1 %v4396_v21, %s4097_s6 }
  0xff   : > { %715 = vrot.lane.b32.xlu0 %v4506_v40, %s4095_s29 }
 0x102   : > { %3585 = vrot.lane.b32.xlu1 %v4402_v22, %s4097_s6 }
 0x103   : > { %3580 = vrot.lane.b32.xlu0 %v4392_v20, %s4097_s6 }
 0x106   : > { %3595 = vrot.lane.b32.xlu1 %v4421_v28, %s4097_s6 }
 0x107   : > { %3590 = vrot.lane.b32.xlu0 %v4514_v41, %s4097_s6 }
 0x10a   : > { %3605 = vrot.lane.b32.xlu1 %v3604_v42, %s4097_s6 }
 0x10b   : > { %3600 = vrot.lane.b32.xlu0 %v4374_v7, %s4098_s9 }
 0x10c   : > { %v4524_v44 = vpop.permute.xlu1 %3365 }
 0x10d   : > { %v4526_v45 = vpop.permute.xlu0 %3355  ;;  %v3368_v51 = vunpack.i.h.bf16 %v4524_v44  ;;  %v5631_v55 = vunpack.i.l.bf16 %v4524_v44 }
 0x10e   : > { %v3358_v46 = vunpack.i.h.bf16 %v4526_v45  ;;  %v3357_v47 = vunpack.i.l.bf16 %v4526_v45  ;;  %3615 = vrot.lane.b32.xlu1 %v4520_v43, %s4097_s6 }
 0x10f   : > { %3610 = vrot.lane.b32.xlu0 %v4382_v12, %s4098_s9 }
 0x110   : > { %v4535_v49 = vpop.permute.xlu1 %3370  ;;  %v467_v50 = vsel %vm465_vm0, %v3357_v47, %v3358_v46 }
 0x111   : > { %v5632_v52 = vunpack.i.l.bf16 %v4535_v49  ;;  %v3361_v53 = vpop.permute.xlu0 %3360  ;;  %v3062_v54 = vpack.c.bf16 %v467_v50, %v4409_v25  ;;  %v3373_v8 = vunpack.i.h.bf16 %v4535_v49 }
 0x112   : > { %v3363_v56 = vunpack.i.h.bf16 %v3361_v53  ;;  %v3362_v57 = vunpack.i.l.bf16 %v3361_v53  ;;  %3625 = vrot.lane.b32.xlu1 %v4372_v3, %s4098_s9 }
 0x113   : > { %3620 = vrot.lane.b32.xlu0 %v4533_v48, %s4090_s14  ;;  %3063 = vmatprep.subr.bf16.mxu0 %v3062_v54  ;;  %v473_v59 = vsel %vm465_vm0, %v3368_v51, %v5632_v52 }
 0x114   : > { %v4553_v60 = vpop.permute.xlu1 %3380  ;;  %v466_v61 = vsel %vm465_vm0, %v3362_v57, %v3357_v47  ;;  %v470_v62 = vsel %vm465_vm0, %v3363_v56, %v5631_v55  ;;  %v469_v22 = vsel %vm465_vm0, %v3373_v8, %v3363_v56  ;;  %v360_v55 = vld [vmem:[#allocation2 + $0x30] sm:$0xff] }
 0x115   : > { %v5619_v63 = vunpack.i.h.bf16 %v4553_v60  ;;  %v3382_v0 = vunpack.i.l.bf16 %v4553_v60  ;;  %v4561_v1 = vpop.permute.xlu0 %3375  ;;  %v3064_v2 = vpack.c.bf16 %v466_v61, %v4423_v29  ;;  %v3066_v3 = vpack.c.bf16 %v473_v59, %v470_v62 }
 0x116   : > { %v5620_v4 = vunpack.i.h.bf16 %v4561_v1  ;;  %v3377_v5 = vunpack.i.l.bf16 %v4561_v1  ;;  %3635 = vrot.lane.b32.xlu1 %v3634_v58, %s4098_s9  ;;  %v4627_v58 = vld [vmem:[#allocation5 + $0x8] sm:$0xff] }
 0x117   : > { %3630 = vrot.lane.b32.xlu0 %v4378_v10, %s4098_s9  ;;  %3065 = vmatpush1.bf16.msra.mxu0 %v3064_v2  ;;  %v1106_v6 = vsel %vm1095_vm1, %v3382_v0, %v5619_v63  ;;  %v3654_v10 = vpack.i.bf16 %v4423_v29, %v4386_v17 }
 0x118   : > { %3067 = vmatprep.subr.bf16.mxu0 %v3066_v3  ;;  %v3391_v9 = vpop.permute.xlu1 %3390  ;;  %v1103_v11 = vsel %vm1095_vm1, %v3377_v5, %v5620_v4  ;;  %1689 = vmatprep.mubr.f32.mxu0 %v4627_v58 }
 0x119   : > { %v3393_v12 = vunpack.i.h.bf16 %v3391_v9  ;;  %v3392_v13 = vunpack.i.l.bf16 %v3391_v9  ;;  %v3386_v14 = vpop.permute.xlu0 %3385  ;;  %v4576_v15 = vpack.c.bf16 %v1106_v6, %v1103_v11 }
 0x11a   : > { %v3387_v16 = vunpack.i.l.bf16 %v3386_v14  ;;  %3645 = vrot.lane.b32.xlu1 %v4392_v20, %s4098_s9  ;;  %v3388_v27 = vunpack.i.h.bf16 %v3386_v14 }
 0x11b   : > { %3640 = vrot.lane.b32.xlu0 %v4520_v43, %s4090_s14  ;;  %3198 = vmatprep.subr.bf16.mxu1 %v4576_v15  ;;  %v1102_v18 = vsel %vm1095_vm1, %v3392_v13, %v3377_v5  ;;  %v1105_v19 = vsel %vm1095_vm1, %v3393_v12, %v3382_v0  ;;  %s3956_s14 = scalar_lea.vmem %s5500_s25, 1536 }
 0x11c   : > { %v4587_v21 = vpop.permute.xlu1 %3400  ;;  %v472_v23 = vsel %vm465_vm0, %v3387_v16, %v3368_v51  ;;  %v4591_v25 = vpack.c.bf16 %v1105_v19, %v1102_v18  ;;  %p3957_p3 = scmp.ne.s32.totalorder %s5500_s25, %s3956_s14 }
 0x11d   : > { %v5630_v20 = vunpack.i.l.bf16 %v4587_v21  ;;  %v4594_v17 = vpop.permute.xlu0 %3395  ;;  %v3068_v26 = vpack.c.bf16 %v472_v23, %v469_v22  ;;  %v3403_v54 = vunpack.i.h.bf16 %v4587_v21 }
 0x11e   : > { %v3398_v29 = vunpack.i.h.bf16 %v4594_v17  ;;  %v5629_v31 = vunpack.i.l.bf16 %v4594_v17  ;;  %3655 = vrot.lane.b32.xlu1 %v3654_v10, %s4098_s9  ;;  %3205 = vmatpush1.bf16.msra.mxu1 %v4591_v25  ;;  %p3958_p2 = pnand %p3957_p3, %p5731_p4 }
 0x11f   : > { %3650 = vrot.lane.b32.xlu0 %v4421_v28, %s4098_s9  ;;  %3069 = vmatpush1.bf16.msra.mxu0 %v3068_v26  ;;  %v475_v5 = vsel %vm465_vm0, %v3403_v54, %v3388_v27 }
 0x120   : > { %v4602_v34 = vpop.permute.xlu1 %3410  ;;  %v476_v35 = vsel %vm465_vm0, %v3388_v27, %v5629_v31  ;;  %v479_v36 = vsel %vm465_vm0, %v3398_v29, %v5630_v20  ;;  %v357_v20 = vld [vmem:[#allocation2 + $0x10] sm:$0xff]  ;;  %p3959_p7 = pneg %p3958_p2 }
 0x121   : > { %v5615_v38 = vunpack.i.h.bf16 %v4602_v34  ;;  %v3412_v42 = vunpack.i.l.bf16 %v4602_v34  ;;  %v4612_v47 = vpop.permute.xlu0 %3405  ;;  %v3070_v50 = vpack.c.bf16 %v479_v36, %v476_v35 }
 0x122   : > { %v5617_v28 = vunpack.i.h.bf16 %v4612_v47  ;;  %v3407_v51 = vunpack.i.l.bf16 %v4612_v47  ;;  %3665 = vrot.lane.b32.xlu1 %v4514_v41, %s4093_s16 }
 0x123   : > { %3660 = vrot.lane.b32.xlu0 %v4533_v48, %s4098_s9  ;;  %3071 = vmatprep.subr.bf16.mxu0 %v3070_v50  ;;  %v1223_v53 = vsel %vm1221_vm2, %v3412_v42, %v5615_v38 }
 0x124   : > { %v1088_v56 = vpop.permute.xlu1 %1087  ;;  %v1109_v57 = vsel %vm1095_vm1, %v3407_v51, %v5617_v28 }
 0x125   : > { %v3416_v59 = vpop.permute.xlu0 %3415  ;;  %v4629_v61 = vpack.c.bf16 %v1223_v53, %v1109_v57 }
 0x126   : > { %v3418_v62 = vunpack.i.h.bf16 %v3416_v59  ;;  %v3417_v0 = vunpack.i.l.bf16 %v3416_v59  ;;  %3675 = vrot.lane.b32.xlu1 %v4440_v32, %s4091_s30 }
 0x127   : > { %3670 = vrot.lane.b32.xlu0 %v4374_v7, %s4091_s30  ;;  %3199 = vmatprep.subr.bf16.mxu1 %v4629_v61  ;;  %v1108_v7 = vsel %vm1095_vm1, %v1088_v56, %v3407_v51 }
 0x128   : > { %v4640_v2 = vsel %vm465_vm0, %v3358_v46, %v3418_v62  ;;  %v4642_v3 = vpop.permute.xlu1 %3425  ;;  %v478_v6 = vsel %vm465_vm0, %v3417_v0, %v3398_v29 }
 0x129   : > { %v3421_v8 = vpop.permute.xlu0 %3420  ;;  %v3072_v9 = vpack.c.bf16 %v478_v6, %v475_v5  ;;  %v5628_v32 = vunpack.i.h.bf16 %v4642_v3  ;;  %v3427_v45 = vunpack.i.l.bf16 %v4642_v3 }
 0x12a   : > { %v3422_v11 = vunpack.i.l.bf16 %v3421_v8  ;;  %3685 = vrot.lane.b32.xlu1 %v4520_v43, %s4098_s9  ;;  %v3423_v35 = vunpack.i.h.bf16 %v3421_v8 }
 0x12b   : > { %3680 = vrot.lane.b32.xlu0 %v4444_v33, %s4091_s30  ;;  %3073 = vmatpush1.bf16.msra.mxu0 %v3072_v9  ;;  %v593_v19 = vsel %vm591_vm3, %v3427_v45, %v5628_v32 }
 0x12c   : > { %v4653_v46 = vpop.permute.xlu1 %3435  ;;  %v1222_v12 = vsel %vm1221_vm2, %v3422_v11, %v3412_v42 }
 0x12d   : > { %v4656_v13 = vpop.permute.xlu0 %3430  ;;  %v4658_v14 = vpack.c.bf16 %v1222_v12, %v1108_v7  ;;  %v5614_v10 = vunpack.i.l.bf16 %v4653_v46  ;;  %v3438_v36 = vunpack.i.h.bf16 %v4653_v46 }
 0x12e   : > { %v5626_v16 = vunpack.i.h.bf16 %v4656_v13  ;;  %v3432_v33 = vunpack.i.l.bf16 %v4656_v13  ;;  %3695 = vrot.lane.b32.xlu1 %v4514_v41, %s4091_s30 }
 0x12f   : > { %3690 = vrot.lane.b32.xlu0 %v4489_v37, %s4093_s16  ;;  %3206 = vmatpush1.bf16.msra.mxu1 %v4658_v14  ;;  %v1226_v57 = vsel %vm1221_vm2, %v3423_v35, %v5614_v10 }
 0x130   : > { %v3446_v18 = vpop.permute.xlu1 %3445  ;;  %v596_v22 = vsel %vm591_vm3, %v3432_v33, %v5626_v16 }
 0x131   : > { %v3448_v23 = vunpack.i.h.bf16 %v3446_v18  ;;  %v3447_v26 = vunpack.i.l.bf16 %v3446_v18  ;;  %v4674_v27 = vpop.permute.xlu0 %3440  ;;  %v3074_v29 = vpack.c.bf16 %v596_v22, %v593_v19 }
 0x132   : > { %v5613_v42 = vunpack.i.l.bf16 %v4674_v27  ;;  %683 = vrot.lane.b32.xlu1 %v4425_v30, %s4095_s29  ;;  %v3443_v53 = vunpack.i.h.bf16 %v4674_v27 }
 0x133   : > { %589 = vrot.lane.b32.xlu0 %v4506_v40, %s4093_s16  ;;  %3075 = vmatprep.subr.bf16.mxu0 %v3074_v29  ;;  %v592_v50 = vsel %vm591_vm3, %v3447_v26, %v3427_v45  ;;  %v595_v51 = vsel %vm591_vm3, %v3448_v23, %v3432_v33 }
 0x134   : > { %v4685_v54 = vpop.permute.xlu1 %3455  ;;  %v3076_v56 = vpack.c.bf16 %v595_v51, %v592_v50  ;;  %v1229_v59 = vsel %vm1221_vm2, %v3438_v36, %v5613_v42  ;;  %v1225_v11 = vsel %vm1221_vm2, %v3443_v53, %v3423_v35 }
 0x135   : > { %v3451_v62 = vpop.permute.xlu0 %3450  ;;  %v4693_v0 = vpack.c.bf16 %v1229_v59, %v1226_v57  ;;  %v5625_v6 = vunpack.i.h.bf16 %v4685_v54  ;;  %v3457_v8 = vunpack.i.l.bf16 %v4685_v54 }
 0x136   : > { %v3452_v5 = vunpack.i.l.bf16 %v3451_v62  ;;  %1093 = vrot.lane.b32.xlu1 %v4506_v40, %s4091_s30  ;;  %3077 = vmatpush1.bf16.msra.mxu0 %v3076_v56  ;;  %v3453_v50 = vunpack.i.h.bf16 %v3451_v62 }
 0x137   : > { %3700 = vrot.lane.b32.xlu0 %v4489_v37, %s4091_s30  ;;  %3200 = vmatprep.subr.bf16.mxu1 %v4693_v0  ;;  %v599_v23 = vsel %vm591_vm3, %v3457_v8, %v5625_v6  ;;  %s4100_s30 = smov [#allocation12]  }
 0x138   : > { %v4702_v9 = vpop.permute.xlu1 %3465  ;;  %v1228_v7 = vsel %vm1221_vm2, %v3452_v5, %v3438_v36 }
 0x139   : > { %v4706_v45 = vpop.permute.xlu0 %3460  ;;  %v4708_v12 = vpack.c.bf16 %v1228_v7, %v1225_v11  ;;  %v5612_v19 = vunpack.i.l.bf16 %v4702_v9 }
 0x13a   : > { %v5624_v33 = vunpack.i.h.bf16 %v4706_v45  ;;  %v3462_v18 = vunpack.i.l.bf16 %v4706_v45  ;;  %3705 = vrot.lane.b32.xlu1 %v4533_v48, %s4092_s10 }
 0x13b   : > { %1187 = vrot.lane.b32.xlu0 %v4425_v30, %s4092_s10  ;;  %3207 = vmatpush1.bf16.msra.mxu1 %v4708_v12  ;;  %v3468_v30 = vunpack.i.h.bf16 %v4702_v9  ;;  %v1232_v5 = vsel %vm1221_vm2, %v3453_v50, %v5612_v19 }
 0x13c   : > { %v3476_v22 = vpop.permute.xlu1 %3475  ;;  %v602_v26 = vsel %vm591_vm3, %v3462_v18, %v5624_v33 }
 0x13d   : > { %v3478_v29 = vunpack.i.h.bf16 %v3476_v22  ;;  %v3477_v35 = vunpack.i.l.bf16 %v3476_v22  ;;  %v4724_v36 = vpop.permute.xlu0 %3470  ;;  %v3078_v48 = vpack.c.bf16 %v602_v26, %v599_v23 }
 0x13e   : > { %v3473_v51 = vunpack.i.h.bf16 %v4724_v36  ;;  %v5611_v53 = vunpack.i.l.bf16 %v4724_v36  ;;  %3715 = vrot.lane.b32.xlu1 %v4514_v41, %s4094_s24 }
 0x13f   : > { %3710 = vrot.lane.b32.xlu0 %v4520_v43, %s4092_s10  ;;  %3079 = vmatprep.subr.bf16.mxu0 %v3078_v48  ;;  %v598_v56 = vsel %vm591_vm3, %v3477_v35, %v3457_v8  ;;  %v601_v57 = vsel %vm591_vm3, %v3478_v29, %v3462_v18  ;;  %s3960_s10 = sshll.u32 %s4100_s30, 4  ;;  %s3961_s10 = int_to_ptr.vmem [resolvable:$false] %s3960_s10 }
 0x140   : > { %v4735_v59 = vpop.permute.xlu1 %3480  ;;  %v3080_v62 = vpack.c.bf16 %v601_v57, %v598_v56  ;;  %v1235_v11 = vsel %vm1221_vm2, %v3468_v30, %v5611_v53  ;;  %v1231_v43 = vsel %vm1221_vm2, %v3473_v51, %v3453_v50  ;;  %s3962_s16 = scalar_lea.vmem %s3961_s10, 3072  ;;  %p3963_p10 = scmp.lt.s32.totalorder %s5500_s25, %s3961_s10 }
 0x141   : > { %v1214_v41 = vpop.permute.xlu0 %1213  ;;  %v4743_v7 = vpack.c.bf16 %v1235_v11, %v1232_v5  ;;  %v5621_v22 = vunpack.i.h.bf16 %v4735_v59  ;;  %v3482_v23 = vunpack.i.l.bf16 %v4735_v59  ;;  %p3964_p8 = scmp.lt.s32.totalorder %s3962_s16, %s3956_s14 }
 0x142   : > { %v1234_v8 = vsel %vm1221_vm2, %v1214_v41, %v3468_v30  ;;  %1345 = vrot.lane.b32.xlu1 %v4506_v40, %s4094_s24  ;;  %3081 = vmatpush1.bf16.msra.mxu0 %v3080_v62 }
 0x143   : > { %v4749_v18 = vpack.c.bf16 %v1234_v8, %v1231_v43  ;;  %3720 = vrot.lane.b32.xlu0 %v4489_v37, %s4094_s24  ;;  %3201 = vmatprep.subr.bf16.mxu1 %v4743_v7  ;;  %v605_v30 = vsel %vm591_vm3, %v3482_v23, %v5621_v22  ;;  %p3965_p0 = por %p3964_p8, %p3963_p10 }
 0x144   : > { %v4756_v26 = vpop.permute.xlu1 %3490 }
 0x145   : > { %v4758_v29 = vpop.permute.xlu0 %3485  ;;  %3208 = vmatpush1.bf16.msra.mxu1 %v4749_v18  ;;  %v5616_v48 = vunpack.i.h.bf16 %v4756_v26  ;;  %v3492_v37 = vunpack.i.l.bf16 %v4756_v26  ;;  %p3966_p5 = pnand %p3965_p0, %p3959_p7 }
 0x146   : > { %v5622_v40 = vunpack.i.h.bf16 %v4758_v29  ;;  %v3487_v35 = vunpack.i.l.bf16 %v4758_v29 }
 0x147   : > { %v1349_v41 = vsel %vm1347_vm5, %v3492_v37, %v5616_v48 }
 0x148   : > { %v584_v50 = vpop.permute.xlu1 %583  ;;  %v719_v51 = vsel %vm717_vm4, %v3487_v35, %v5622_v40 }
 0x149   : > { %v4771_v56 = vpop.permute.xlu0 %3495  ;;  %v3082_v57 = vpack.c.bf16 %v719_v51, %v605_v30  ;;  %v604_v10 = vsel %vm591_vm3, %v584_v50, %v3482_v23 }
 0x14a   : > { %v5618_v62 = vunpack.i.h.bf16 %v4771_v56  ;;  %v3497_v5 = vunpack.i.l.bf16 %v4771_v56 }
 0x14b   : > { %3083 = vmatprep.subr.bf16.mxu0 %v3082_v57 }
 0x14c   : > { %v3506_v11 = vpop.permute.xlu1 %3505  ;;  %v1352_v43 = vsel %vm1347_vm5, %v3497_v5, %v5618_v62 }
 0x14d   : > { %v3508_v8 = vunpack.i.h.bf16 %v3506_v11  ;;  %v3507_v53 = vunpack.i.l.bf16 %v3506_v11  ;;  %v3501_v19 = vpop.permute.xlu0 %3500  ;;  %v4781_v42 = vpack.c.bf16 %v1352_v43, %v1349_v41 }
 0x14e   : > { %v3502_v30 = vunpack.i.l.bf16 %v3501_v19  ;;  %v3503_v43 = vunpack.i.h.bf16 %v3501_v19 }
 0x14f   : > { %3202 = vmatprep.subr.bf16.mxu1 %v4781_v42  ;;  %v1348_v51 = vsel %vm1347_vm5, %v3507_v53, %v3492_v37  ;;  %v1351_v57 = vsel %vm1347_vm5, %v3508_v8, %v3497_v5 }
 0x150   : > { %v4787_v38 = vpop.permute.xlu1 %3515  ;;  %v718_v48 = vsel %vm717_vm4, %v3502_v30, %v3487_v35  ;;  %v4790_v28 = vpack.c.bf16 %v1351_v57, %v1348_v51 }
 0x151   : > { %v3517_v11 = vunpack.i.l.bf16 %v4787_v38  ;;  %v4793_v62 = vpop.permute.xlu0 %3510  ;;  %v3084_v41 = vpack.c.bf16 %v718_v48, %v604_v10  ;;  %v3518_v30 = vunpack.i.h.bf16 %v4787_v38 }
 0x152   : > { %v3513_v63 = vunpack.i.h.bf16 %v4793_v62  ;;  %v3512_v53 = vunpack.i.l.bf16 %v4793_v62  ;;  %3209 = vmatpush1.bf16.msra.mxu1 %v4790_v28 }
 0x153   : > { %3085 = vmatpush1.bf16.msra.mxu0 %v3084_v41  ;;  %v721_v33 = vsel %vm717_vm4, %v3518_v30, %v3503_v43 }
 0x154   : > { %v4798_v23 = vpop.permute.xlu1 %3525  ;;  %v722_v37 = vsel %vm717_vm4, %v3503_v43, %v3512_v53  ;;  %v725_v35 = vsel %vm717_vm4, %v3513_v63, %v3517_v11 }
 0x155   : > { %v5623_v50 = vunpack.i.h.bf16 %v4798_v23  ;;  %v3527_v10 = vunpack.i.l.bf16 %v4798_v23  ;;  %v4806_v19 = vpop.permute.xlu0 %3520  ;;  %v3086_v48 = vpack.c.bf16 %v725_v35, %v722_v37 }
 0x156   : > { %v5627_v62 = vunpack.i.h.bf16 %v4806_v19  ;;  %v3522_v5 = vunpack.i.l.bf16 %v4806_v19 }
 0x157   : > { %3087 = vmatprep.subr.bf16.mxu0 %v3086_v48  ;;  %v1358_v8 = vsel %vm1347_vm5, %v3527_v10, %v5623_v50 }
 0x158   : > { %v3536_v51 = vpop.permute.xlu1 %3535  ;;  %v1355_v57 = vsel %vm1347_vm5, %v3522_v5, %v5627_v62 }
 0x159   : > { %v3538_v41 = vunpack.i.h.bf16 %v3536_v51  ;;  %v3537_v4 = vunpack.i.l.bf16 %v3536_v51  ;;  %v3531_v22 = vpop.permute.xlu0 %3530  ;;  %v4817_v37 = vpack.c.bf16 %v1358_v8, %v1355_v57 }
 0x15a   : > { %v3532_v35 = vunpack.i.l.bf16 %v3531_v22  ;;  %v3533_v57 = vunpack.i.h.bf16 %v3531_v22 }
 0x15b   : > { %3203 = vmatprep.subr.bf16.mxu1 %v4817_v37  ;;  %v1354_v48 = vsel %vm1347_vm5, %v3537_v4, %v3522_v5  ;;  %v1357_v40 = vsel %vm1347_vm5, %v3538_v41, %v3527_v10 }
 0x15c   : > { %v4822_v50 = vpop.permute.xlu1 %3545  ;;  %v724_v6 = vsel %vm717_vm4, %v3532_v35, %v3513_v63  ;;  %v4826_v16 = vpack.c.bf16 %v1357_v40, %v1354_v48 }
 0x15d   : > { %v5633_v51 = vunpack.i.l.bf16 %v4822_v50  ;;  %v4829_v62 = vpop.permute.xlu0 %3540  ;;  %v3088_v8 = vpack.c.bf16 %v724_v6, %v721_v33  ;;  %v3548_v10 = vunpack.i.h.bf16 %v4822_v50 }
 0x15e   : > { %v3543_v32 = vunpack.i.h.bf16 %v4829_v62  ;;  %v3542_v4 = vunpack.i.l.bf16 %v4829_v62  ;;  %3210 = vmatpush1.bf16.msra.mxu1 %v4826_v16 }
 0x15f   : > { %3089 = vmatpush1.bf16.msra.mxu0 %v3088_v8  ;;  %v727_v62 = vsel %vm717_vm4, %v3548_v10, %v3533_v57  ;;  %v4854_v10 = vld [vmem:[#allocation5 + $0xd0] sm:$0xff] }
 0x160   : > { %v3556_v43 = vpop.permute.xlu1 %3555  ;;  %v728_v63 = vsel %vm717_vm4, %v3533_v57, %v3542_v4  ;;  %v731_v40 = vsel %vm717_vm4, %v3543_v32, %v5633_v51  ;;  %5668 = vst [vmem:[#allocation28_spill] sm:$0xff] %v4854_v10 }
 0x161   : > { %v3551_v5 = vpop.permute.xlu0 %3550  ;;  %v3090_v30 = vpack.c.bf16 %v731_v40, %v728_v63  ;;  %v3557_v33 = vunpack.i.l.bf16 %v3556_v43 }
 0x162   : > { %v3552_v6 = vunpack.i.l.bf16 %v3551_v5  ;;  %v3553_v22 = vunpack.i.h.bf16 %v3551_v5  ;;  %v3144_v5 = vpack.c.bf16 %v360_v55, %v357_v20  ;;  %v4865_v55 = vld [vmem:[#allocation5 + $0xe8] sm:$0xff]  ;;  %v3558_v20 = vunpack.i.h.bf16 %v3556_v43 }
 0x163   : > { %3091 = vmatprep.subr.bf16.mxu0 %v3090_v30  ;;  %v726_v40 = vsel %vm717_vm4, %v3517_v11, %v3557_v33 }
 0x164   : > { %v4839_v41 = vpop.permute.xlu1 %1343  ;;  %v730_v35 = vsel %vm717_vm4, %v3552_v6, %v3543_v32  ;;  %v723_v63 = vsel %vm717_vm4, %v3512_v53, %v3553_v22  ;;  %v729_v51 = vsel %vm717_vm4, %v3542_v4, %v3558_v20 }
 0x165   : > { %5667 = vst [vmem:[#allocation27_spill] sm:$0xff] %v4839_v41  ;;  %v1342_v48 = vpop.permute.xlu0 %1341  ;;  %v3092_v8 = vpack.c.bf16 %v730_v35, %v727_v62  ;;  %v3142_v6 = vpack.c.bf16 %v726_v40, %v723_v63  ;;  %v363_v63 = vld [vmem:[#allocation2 + $0x50] sm:$0xff] }
 0x166   : > { %v4845_v31 = vsel %vm1347_vm5, %v1342_v48, %v4839_v41  ;;  %v366_v40 = vld [vmem:[#allocation2 + $0x70] sm:$0xff] }
 0x167   : > { %3093 = vmatpush1.bf16.msra.mxu0 %v3092_v8  ;;  %3204 = vmatprep.subr.mxu1 %v4845_v31 }
 0x168   : > { %v4852_v57 = vpop.permute.xlu1 %3560 }
 0x169   : > { %v1340_v32 = vpop.permute.xlu0 %1339  ;;  %v5635_v62 = vunpack.i.h.bf16 %v4852_v57  ;;  %v3562_v53 = vunpack.i.l.bf16 %v4852_v57 }
 0x16a   : > { %v4857_v30 = vsel %vm1347_vm5, %v1340_v32, %v1342_v48 }
 0x16b   : > { %3211 = vmatpush1.msra.mxu1 %v4857_v30 }
 0x16c   : > { %3143 = vmatprep.subr.bf16.mxu1 %v3142_v6  ;;  %v3571_v38 = vpop.permute.xlu1 %3570  ;;  %2863 = vmatmul.mubr.msk.f32.vlgmr.msra.gmra.mrb[0].mxu1 %vm1576_vm6, %v4854_v10  ;;  %v845_v6 = vsel %vm843_vm7, %v3562_v53, %v5635_v62  ;;  %v5669_v10 = vunpack.i.l.bf16 %v4822_v50  ;;  %v3148_v62 = vpack.c.bf16 %v366_v40, %v363_v63  ;;  %v4889_v50 = vld [vmem:[#allocation5 + $0x118] sm:$0xff] }
 0x16d   : > { %v3573_v11 = vunpack.i.h.bf16 %v3571_v38  ;;  %v3572_v33 = vunpack.i.l.bf16 %v3571_v38  ;;  %v3566_v22 = vpop.permute.xlu0 %3565  ;;  %3145 = vmatpush3.bf16.msra.mxu1 %v3144_v5  ;;  %1904 = vmatprep.mubr.f32.mxu1 %v5639_v39 }
 0x16e   : > { %v3568_v35 = vunpack.i.h.bf16 %v3566_v22  ;;  %v3567_v48 = vunpack.i.l.bf16 %v3566_v22 }
 0x16f   : > { %v844_v8 = vsel %vm843_vm7, %v3572_v33, %v3562_v53  ;;  %v4878_v33 = vld [vmem:[#allocation5 + $0x100] sm:$0xff] }
 0x170   : > { %v4868_v32 = vpop.permute.xlu1 %3575  ;;  %v848_v38 = vsel %vm843_vm7, %v3567_v48, %v3568_v35  ;;  %v847_v5 = vsel %vm843_vm7, %v3573_v11, %v3567_v48  ;;  %2864 = vmatmul.mubr.msk.f32.gmra.mrb[2].mxu1 %vm1576_vm6, %v4865_v55 }
 0x171   : > { %v716_v43 = vpop.permute.xlu0 %715  ;;  %v3094_v52 = vpack.c.bf16 %v848_v38, %v845_v6  ;;  %v3096_v22 = vpack.c.bf16 %v847_v5, %v844_v8  ;;  %1910 = vmatprep.mubr.f32.mxu1 %v5639_v39  ;;  %v3578_v11 = vunpack.i.h.bf16 %v4868_v32  ;;  %v3577_v48 = vunpack.i.l.bf16 %v4868_v32 }
 0x172   : > { %v732_v53 = vsel %vm717_vm4, %v5669_v10, %v716_v43 }
 0x173   : > { %v3146_v41 = vpack.c.bf16 %v732_v53, %v729_v51  ;;  %3095 = vmatprep.subr.bf16.mxu0 %v3094_v52  ;;  %v851_v20 = vsel %vm843_vm7, %v3577_v48, %v3578_v11 }
 0x174   : > { %3097 = vmatpush1.bf16.msra.mxu0 %v3096_v22  ;;  %v3586_v6 = vpop.permute.xlu1 %3585  ;;  %2865 = vmatmul.mubr.msk.f32.gmra.mrb[4].mxu1 %vm1576_vm6, %v4878_v33  ;;  %v4900_v22 = vld [vmem:[#allocation5 + $0x130] sm:$0xff] }
 0x175   : > { %v3588_v8 = vunpack.i.h.bf16 %v3586_v6  ;;  %v3587_v38 = vunpack.i.l.bf16 %v3586_v6  ;;  %v3581_v5 = vpop.permute.xlu0 %3580  ;;  %3147 = vmatprep.subr.bf16.mxu1 %v3146_v41  ;;  %1916 = vmatprep.mubr.f32.mxu1 %v5639_v39  ;;  %5670 = vst [vmem:[#allocation29_spill] sm:$0xff] %v4900_v22 }
 0x176   : > { %v3583_v4 = vunpack.i.h.bf16 %v3581_v5  ;;  %v3582_v51 = vunpack.i.l.bf16 %v3581_v5  ;;  %3149 = vmatpush3.bf16.msra.mxu1 %v3148_v62 }
 0x177   : > { %v850_v52 = vsel %vm843_vm7, %v3587_v38, %v3577_v48 }
 0x178   : > { %v4892_v10 = vpop.permute.xlu1 %3595  ;;  %v854_v63 = vsel %vm843_vm7, %v3582_v51, %v3583_v4  ;;  %v853_v40 = vsel %vm843_vm7, %v3588_v8, %v3582_v51  ;;  %2866 = vmatmul.mubr.msk.f32.gmra.mrb[6].mxu1 %vm1576_vm6, %v4889_v50  ;;  %v5671_v8 = vunpack.i.h.bf16 %v4852_v57 }
 0x179   : > { %v3591_v41 = vpop.permute.xlu0 %3590  ;;  %v3098_v32 = vpack.c.bf16 %v854_v63, %v851_v20  ;;  %v3100_v43 = vpack.c.bf16 %v853_v40, %v850_v52  ;;  %1922 = vmatprep.mubr.f32.mxu1 %v5639_v39  ;;  %v5637_v6 = vunpack.i.h.bf16 %v4892_v10  ;;  %v3597_v48 = vunpack.i.l.bf16 %v4892_v10 }
 0x17a   : > { %v3593_v62 = vunpack.i.h.bf16 %v3591_v41  ;;  %v3592_v53 = vunpack.i.l.bf16 %v3591_v41  ;;  %v3152_v63 = vpack.c.bf16 %v4640_v2, %v4407_v24  ;;  %v4922_v2 = vld [vmem:[#allocation5 + $0x160] sm:$0xff] }
 0x17b   : > { %3099 = vmatprep.subr.bf16.mxu0 %v3098_v32  ;;  %v4913_v32 = vld [vmem:[#allocation5 + $0x148] sm:$0xff] }
 0x17c   : > { %3101 = vmatpush1.bf16.msra.mxu0 %v3100_v43  ;;  %v3606_v38 = vpop.permute.xlu1 %3605  ;;  %v846_v5 = vsel %vm843_vm7, %v5671_v8, %v3592_v53  ;;  %v849_v51 = vsel %vm843_vm7, %v3568_v35, %v3593_v62  ;;  %2867 = vmatmul.mubr.msk.f32.gmra.mrb[8].mxu1 %vm1576_vm6, %v4900_v22  ;;  %5672 = vst [vmem:[#allocation30_spill] sm:$0xff] %v4913_v32 }
 0x17d   : > { %v3601_v52 = vpop.permute.xlu0 %3600  ;;  %v3150_v20 = vpack.c.bf16 %v849_v51, %v846_v5  ;;  %1928 = vmatprep.mubr.f32.mxu1 %v5639_v39  ;;  %v3608_v57 = vunpack.i.h.bf16 %v3606_v38  ;;  %v3607_v43 = vunpack.i.l.bf16 %v3606_v38  ;;  %v857_v62 = vsel %vm843_vm7, %v3597_v48, %v5637_v6 }
 0x17e   : > { %v3603_v40 = vunpack.i.h.bf16 %v3601_v52  ;;  %v3602_v41 = vunpack.i.l.bf16 %v3601_v52 }
 0x17f   : > { %3151 = vmatprep.subr.bf16.mxu1 %v3150_v20  ;;  %v852_v38 = vsel %vm843_vm7, %v3578_v11, %v3608_v57  ;;  %v4933_v11 = vld [vmem:[#allocation5 + $0x178] sm:$0xff] }
 0x180   : > { %3153 = vmatpush3.bf16.msra.mxu1 %v3152_v63  ;;  %v3616_v35 = vpop.permute.xlu1 %3615  ;;  %v971_v53 = vsel %vm969_vm8, %v3602_v41, %v3603_v40  ;;  %v856_v63 = vsel %vm843_vm7, %v3607_v43, %v3597_v48  ;;  %5674 = vst [vmem:[#allocation31_spill] sm:$0xff] %v4933_v11  ;;  %v5675_v48 = vunpack.i.l.bf16 %v4535_v49 }
 0x181   : > { %v3617_v8 = vunpack.i.l.bf16 %v3616_v35  ;;  %v3611_v5 = vpop.permute.xlu0 %3610  ;;  %v3102_v51 = vpack.c.bf16 %v971_v53, %v857_v62  ;;  %2868 = vmatmul.mubr.msk.f32.gmra.mrb[10].mxu1 %vm1576_vm6, %v4913_v32 }
 0x182   : > { %v3612_v24 = vunpack.i.l.bf16 %v3611_v5  ;;  %1934 = vmatprep.mubr.f32.mxu1 %v5639_v39 }
 0x183   : > { %3103 = vmatprep.subr.bf16.mxu0 %v3102_v51  ;;  %v855_v52 = vsel %vm843_vm7, %v3583_v4, %v3617_v8  ;;  %v5673_v51 = vmov 0.0   ;;  %v3618_v4 = vunpack.i.h.bf16 %v3616_v35 }
 0x184   : > { %v4926_v20 = vpop.permute.xlu1 %3625  ;;  %v970_v6 = vsel %vm969_vm8, %v3612_v24, %v3602_v41  ;;  %v3154_v62 = vpack.c.bf16 %v855_v52, %v852_v38  ;;  %v4099_v24 = vmov 0   ;;  %v2250_v38 = vld [vmem:[#allocation8 + $0x8] sm:$0xff] }
 0x185   : > { %v3621_v53 = vpop.permute.xlu0 %3620  ;;  %v3104_v22 = vpack.c.bf16 %v970_v6, %v856_v63  ;;  %2869 = vmatmul.mubr.msk.f32.gmra.mrb[12].mxu1 %vm1576_vm6, %v4922_v2  ;;  %v5642_v57 = vunpack.i.l.bf16 %v4926_v20  ;;  %v5676_v6 = vunpack.i.l.bf16 %v4524_v44  ;;  %3725 = vset.pattern.permute.xlu1 %v4099_v24  ;;  %v3628_v52 = vunpack.i.h.bf16 %v4926_v20 }
 0x186   : > { %v3623_v39 = vunpack.i.h.bf16 %v3621_v53  ;;  %v3622_v32 = vunpack.i.l.bf16 %v3621_v53  ;;  %3155 = vmatprep.subr.bf16.mxu1 %v3154_v62  ;;  %1940 = vmatprep.mubr.f32.mxu1 %v5673_v51 }
 0x187   : > { %3105 = vmatpush1.bf16.msra.mxu0 %v3104_v22  ;;  %3724 = vset.pattern.permute.xlu0 %v4099_v24 }
 0x188   : > { %v474_v41 = vsel %vm465_vm0, %v5675_v48, %v3623_v39  ;;  %v471_v43 = vsel %vm465_vm0, %v5676_v6, %v3622_v32  ;;  %v3636_v8 = vpop.permute.xlu1 %3635  ;;  %2268 = vperm.xlu1 %3725, %v2250_v38   ;;  %v3613_v39 = vunpack.i.h.bf16 %v3611_v5  ;;  %v5677_v32 = vunpack.i.h.bf16 %v4892_v10  ;;  %v2251_v6 = vld [vmem:[#allocation8 + $0x10] sm:$0xff] }
 0x189   : > { %v3156_v63 = vpack.c.bf16 %v474_v41, %v471_v43  ;;  %v3638_v35 = vunpack.i.h.bf16 %v3636_v8  ;;  %v3637_v22 = vunpack.i.l.bf16 %v3636_v8  ;;  %v4943_v62 = vpop.permute.xlu0 %3630  ;;  %2870 = vmatmul.mubr.msk.f32.gmra.mrb[14].mxu1 %vm1576_vm6, %v4933_v11  ;;  %v2249_v43 = vld [vmem:[#allocation8] sm:$0xff] }
 0x18a   : > { %v3633_v44 = vunpack.i.h.bf16 %v4943_v62  ;;  %v3632_v49 = vunpack.i.l.bf16 %v4943_v62  ;;  %2011 = vmatprep.mubr.f32.mxu1 %v4627_v58  ;;  %v858_v53 = vsel %vm843_vm7, %v5677_v32, %v3618_v4  ;;  %v974_v5 = vsel %vm969_vm8, %v3613_v39, %v5642_v57  ;;  %2263 = vperm.xlu0 %3724, %v2249_v43   ;;  %v2253_v32 = vld [vmem:[#allocation8 + $0x20] sm:$0xff] }
 0x18b   : > { %3157 = vmatpush3.bf16.msra.mxu1 %v3156_v63  ;;  %v972_v48 = vsel %vm969_vm8, %v3603_v40, %v3638_v35  ;;  %v976_v41 = vsel %vm969_vm8, %v3637_v22, %v3628_v52  ;;  %v2252_v63 = vld [vmem:[#allocation8 + $0x18] sm:$0xff] }
 0x18c   : > { %v4955_v8 = vpop.permute.xlu1 %3645  ;;  %v977_v58 = vsel %vm969_vm8, %v3628_v52, %v3632_v49  ;;  %v3158_v24 = vpack.c.bf16 %v972_v48, %v858_v53  ;;  %v973_v10 = vsel %vm969_vm8, %v3633_v44, %v3613_v39  ;;  %2273 = vperm.xlu1 %3725, %v2251_v6   ;;  %v5678_v52 = vunpack.i.l.bf16 %v4587_v21 }
 0x18d   : > { %v3641_v4 = vpop.permute.xlu0 %3640  ;;  %v3106_v40 = vpack.c.bf16 %v977_v58, %v974_v5  ;;  %v3108_v38 = vpack.c.bf16 %v976_v41, %v973_v10  ;;  %v5644_v57 = vunpack.i.h.bf16 %v4955_v8  ;;  %v3647_v11 = vunpack.i.l.bf16 %v4955_v8  ;;  %v2254_v58 = vld [vmem:[#allocation8 + $0x28] sm:$0xff] }
 0x18e   : > { %v3643_v35 = vunpack.i.h.bf16 %v3641_v4  ;;  %v3642_v22 = vunpack.i.l.bf16 %v3641_v4  ;;  %3159 = vmatprep.subr.bf16.mxu1 %v3158_v24  ;;  %v5679_v39 = vunpack.i.l.bf16 %v4594_v17  ;;  %2278 = vperm.xlu0 %3724, %v2252_v63   ;;  %v2255_v4 = vld [vmem:[#allocation8 + $0x30] sm:$0xff] }
 0x18f   : > { %3107 = vmatprep.subr.bf16.mxu0 %v3106_v40  ;;  %v980_v17 = vsel %vm969_vm8, %v3647_v11, %v5644_v57 }
 0x190   : > { %v480_v53 = vsel %vm465_vm0, %v5678_v52, %v3643_v35  ;;  %v477_v44 = vsel %vm465_vm0, %v5679_v39, %v3642_v22  ;;  %3109 = vmatpush1.bf16.msra.mxu0 %v3108_v38  ;;  %v3656_v48 = vpop.permute.xlu1 %3655  ;;  %2355 = vperm.xlu1 %3725, %v2253_v32   ;;  %v2256_v39 = vld [vmem:[#allocation8 + $0x38] sm:$0xff] }
 0x191   : > { %v3160_v41 = vpack.c.bf16 %v480_v53, %v477_v44  ;;  %v3658_v6 = vunpack.i.h.bf16 %v3656_v48  ;;  %v3657_v43 = vunpack.i.l.bf16 %v3656_v48  ;;  %v3651_v5 = vpop.permute.xlu0 %3650 }
 0x192   : > { %v3653_v24 = vunpack.i.h.bf16 %v3651_v5  ;;  %v3652_v10 = vunpack.i.l.bf16 %v3651_v5  ;;  %2360 = vperm.xlu0 %3724, %v2254_v58  }
 0x193   : > { %3161 = vmatpush3.bf16.msra.mxu1 %v3160_v41  ;;  %v979_v21 = vsel %vm969_vm8, %v3657_v43, %v3647_v11  ;;  %v2257_v41 = vld [vmem:[#allocation8 + $0x40] sm:$0xff]  ;;  %v5680_v43 = vunpack.i.h.bf16 %v4642_v3  ;;  %v5681_v11 = vunpack.i.h.bf16 %v4656_v13  ;;  %v2258_v13 = vld [vmem:[#allocation8 + $0x48] sm:$0xff] }
 0x194   : > { %v3666_v40 = vpop.permute.xlu1 %3665  ;;  %v983_v38 = vsel %vm969_vm8, %v3652_v10, %v3653_v24  ;;  %v982_v63 = vsel %vm969_vm8, %v3658_v6, %v3652_v10  ;;  %2365 = vperm.xlu1 %3725, %v2255_v4   ;;  %v5682_v10 = vunpack.i.l.bf16 %v4926_v20 }
 0x195   : > { %v3668_v35 = vunpack.i.h.bf16 %v3666_v40  ;;  %v3667_v22 = vunpack.i.l.bf16 %v3666_v40  ;;  %v3661_v32 = vpop.permute.xlu0 %3660  ;;  %v3110_v52 = vpack.c.bf16 %v983_v38, %v980_v17  ;;  %v3112_v53 = vpack.c.bf16 %v982_v63, %v979_v21 }
 0x196   : > { %v3663_v44 = vunpack.i.h.bf16 %v3661_v32  ;;  %v3662_v48 = vunpack.i.l.bf16 %v3661_v32  ;;  %2370 = vperm.xlu0 %3724, %v2256_v39   ;;  %v2260_v39 = vld [vmem:[#allocation8 + $0x58] sm:$0xff] }
 0x197   : > { %v594_v5 = vsel %vm591_vm3, %v5680_v43, %v3667_v22  ;;  %v597_v57 = vsel %vm591_vm3, %v5681_v11, %v3668_v35  ;;  %3111 = vmatprep.subr.bf16.mxu0 %v3110_v52 }
 0x198   : > { %v3164_v6 = vpack.c.bf16 %v597_v57, %v594_v5  ;;  %3113 = vmatpush1.bf16.msra.mxu0 %v3112_v53  ;;  %v3676_v58 = vpop.permute.xlu1 %3675  ;;  %v975_v4 = vsel %vm969_vm8, %v5682_v10, %v3662_v48  ;;  %v978_v21 = vsel %vm969_vm8, %v3632_v49, %v3663_v44  ;;  %2447 = vperm.xlu1 %3725, %v2257_v41   ;;  %v2259_v57 = vld [vmem:[#allocation8 + $0x50] sm:$0xff]  ;;  %v5683_v41 = vunpack.i.h.bf16 %v4955_v8  ;;  %v1393_v8 = vld [vmem:[#allocation5] sm:$0xff] }
 0x199   : > { %v3678_v3 = vunpack.i.h.bf16 %v3676_v58  ;;  %v3677_v40 = vunpack.i.l.bf16 %v3676_v58  ;;  %v3671_v17 = vpop.permute.xlu0 %3670  ;;  %v3162_v38 = vpack.c.bf16 %v978_v21, %v975_v4 }
 0x19a   : > { %v3673_v63 = vunpack.i.h.bf16 %v3671_v17  ;;  %v3672_v35 = vunpack.i.l.bf16 %v3671_v17  ;;  %2452 = vperm.xlu0 %3724, %v2258_v13  }
 0x19b   : > { %3163 = vmatprep.subr.bf16.mxu1 %v3162_v38  ;;  %v1100_v22 = vsel %vm1095_vm1, %v3677_v40, %v3678_v3 }
 0x19c   : > { %3165 = vmatpush3.bf16.msra.mxu1 %v3164_v6  ;;  %v3686_v20 = vpop.permute.xlu1 %3685  ;;  %v1097_v32 = vsel %vm1095_vm1, %v3672_v35, %v3673_v63  ;;  %2457 = vperm.xlu1 %3725, %v2259_v57  }
 0x19d   : > { %v3688_v62 = vunpack.i.h.bf16 %v3686_v20  ;;  %v3687_v49 = vunpack.i.l.bf16 %v3686_v20  ;;  %v3681_v52 = vpop.permute.xlu0 %3680  ;;  %v3114_v53 = vpack.c.bf16 %v1100_v22, %v1097_v32  ;;  %v5684_v20 = vunpack.i.h.bf16 %v4685_v54 }
 0x19e   : > { %v3683_v44 = vunpack.i.h.bf16 %v3681_v52  ;;  %v3682_v48 = vunpack.i.l.bf16 %v3681_v52  ;;  %2462 = vperm.xlu0 %3724, %v2260_v39   ;;  %v5686_v39 = vunpack.i.h.bf16 %v4758_v29  ;;  %v1400_v29 = vld [vmem:[#allocation5 + $0x38] sm:$0xff] }
 0x19f   : > { %3115 = vmatprep.subr.bf16.mxu0 %v3114_v53  ;;  %v981_v43 = vsel %vm969_vm8, %v5683_v41, %v3687_v49  ;;  %v984_v5 = vsel %vm969_vm8, %v3653_v24, %v3688_v62 }
 0x1a0   : > { %v3696_v11 = vpop.permute.xlu1 %3695  ;;  %v1096_v6 = vsel %vm1095_vm1, %v3682_v48, %v3672_v35  ;;  %v1099_v58 = vsel %vm1095_vm1, %v3683_v44, %v3677_v40  ;;  %v3166_v10 = vpack.c.bf16 %v984_v5, %v981_v43  ;;  %v5685_v40 = vunpack.i.h.bf16 %v4706_v45  ;;  %v1397_v44 = vld [vmem:[#allocation5 + $0x20] sm:$0xff]  ;;  %v1396_v45 = vld [vmem:[#allocation5 + $0x18] sm:$0xff] }
 0x1a1   : > { %v3698_v4 = vunpack.i.h.bf16 %v3696_v11  ;;  %v3697_v21 = vunpack.i.l.bf16 %v3696_v11  ;;  %v3691_v17 = vpop.permute.xlu0 %3690  ;;  %v3116_v38 = vpack.c.bf16 %v1099_v58, %v1096_v6  ;;  %v5688_v11 = vunpack.i.h.bf16 %v4561_v1  ;;  %v1403_v1 = vld [vmem:[#allocation5 + $0x50] sm:$0xff] }
 0x1a2   : > { %v3693_v13 = vunpack.i.h.bf16 %v3691_v17  ;;  %v3692_v57 = vunpack.i.l.bf16 %v3691_v17  ;;  %3167 = vmatprep.subr.bf16.mxu1 %v3166_v10  ;;  %v5689_v6 = vunpack.i.h.bf16 %v4553_v60  ;;  %v1402_v60 = vld [vmem:[#allocation5 + $0x48] sm:$0xff] }
 0x1a3   : > { %3117 = vmatpush1.bf16.msra.mxu0 %v3116_v38  ;;  %v1098_v22 = vsel %vm1095_vm1, %v3673_v63, %v3697_v21  ;;  %v1101_v24 = vsel %vm1095_vm1, %v3678_v3, %v3698_v4  ;;  %v5687_v3 = vunpack.i.h.bf16 %v4735_v59  ;;  %v1399_v59 = vld [vmem:[#allocation5 + $0x30] sm:$0xff] }
 0x1a4   : > { %v600_v35 = vsel %vm591_vm3, %v5684_v20, %v3692_v57  ;;  %v603_v32 = vsel %vm591_vm3, %v5685_v40, %v3693_v13  ;;  %3119 = vmatprep.subr.bf16.mxu0 %v4576_v15  ;;  %v684_v62 = vpop.permute.xlu1 %683  ;;  %v3170_v49 = vpack.c.bf16 %v1101_v24, %v1098_v22  ;;  %v5693_v24 = vunpack.i.l.bf16 %v4674_v27 }
 0x1a5   : > { %v3168_v52 = vpack.c.bf16 %v603_v32, %v600_v35  ;;  %v590_v53 = vpop.permute.xlu0 %589  ;;  %v720_v63 = vsel %vm717_vm4, %v5686_v39, %v684_v62  ;;  %v5694_v27 = vunpack.i.l.bf16 %v4702_v9  ;;  %v5696_v9 = vunpack.i.h.bf16 %v4756_v26 }
 0x1a6   : > { %v606_v54 = vsel %vm591_vm3, %v5687_v3, %v590_v53  ;;  %1690 = vmatmul.mubr.f32.vlgmr.msra.gmra.mrb[0].mxu0 %v1393_v8  ;;  %v5695_v53 = vunpack.i.l.bf16 %v4724_v36 }
 0x1a7   : > { %3121 = vmatpush1.bf16.msra.mxu0 %v4591_v25  ;;  %3169 = vmatpush3.bf16.msra.mxu1 %v3168_v52  ;;  %v3172_v48 = vpack.c.bf16 %v720_v63, %v606_v54 }
 0x1a8   : > { %3123 = vmatprep.subr.bf16.mxu0 %v4629_v61  ;;  %3171 = vmatprep.subr.bf16.mxu1 %v3170_v49  ;;  %v1094_v15 = vpop.permute.xlu1 %1093 }
 0x1a9   : > { %v3701_v41 = vpop.permute.xlu0 %3700  ;;  %1695 = vmatprep.mubr.f32.mxu0 %v1397_v44 }
 0x1aa   : > { %v3703_v43 = vunpack.i.h.bf16 %v3701_v41  ;;  %v3702_v5 = vunpack.i.l.bf16 %v3701_v41  ;;  %1696 = vmatmul.mubr.f32.gmra.mrb[2].mxu0 %v1396_v45  ;;  %v5699_v41 = vunpack.i.h.bf16 %v4798_v23  ;;  %v1417_v23 = vld [vmem:[#allocation5 + $0xc0] sm:$0xff] }
 0x1ab   : > { %3125 = vmatpush1.bf16.msra.mxu0 %v4658_v14  ;;  %3173 = vmatpush3.bf16.msra.mxu1 %v3172_v48  ;;  %v5690_v14 = vunpack.i.h.bf16 %v4612_v47  ;;  %v5692_v47 = vunpack.i.l.bf16 %v4653_v46  ;;  %v5698_v48 = vunpack.i.h.bf16 %v4806_v19 }
 0x1ac   : > { %3127 = vmatprep.subr.bf16.mxu0 %v4693_v0  ;;  %v3706_v25 = vpop.permute.xlu1 %3705  ;;  %1701 = vmatprep.mubr.f32.mxu0 %v1400_v29  ;;  %v1104_v61 = vsel %vm1095_vm1, %v5688_v11, %v3702_v5  ;;  %v1107_v58 = vsel %vm1095_vm1, %v5689_v6, %v3703_v43  ;;  %v5691_v0 = vunpack.i.h.bf16 %v4602_v34  ;;  %v1418_v43 = vld [vmem:[#allocation5 + $0xc8] sm:$0xff]  ;;  %v5700_v5 = vld [vmem:[#allocation27_spill] sm:$0xff]  ;;  %v1424_v11 = vld [vmem:[#allocation5 + $0xf8] sm:$0xff] }
 0x1ad   : > { %v3708_v10 = vunpack.i.h.bf16 %v3706_v25  ;;  %v3707_v4 = vunpack.i.l.bf16 %v3706_v25  ;;  %v1188_v21 = vpop.permute.xlu0 %1187  ;;  %v3174_v17 = vpack.c.bf16 %v1107_v58, %v1104_v61  ;;  %v1110_v38 = vsel %vm1095_vm1, %v5690_v14, %v1094_v15  ;;  %v1411_v15 = vld [vmem:[#allocation5 + $0x90] sm:$0xff]  ;;  %v1421_v25 = vld [vmem:[#allocation5 + $0xe0] sm:$0xff]  ;;  %v1426_v58 = vld [vmem:[#allocation5 + $0x108] sm:$0xff] }
 0x1ae   : > { %v1224_v13 = vsel %vm1221_vm2, %v5691_v0, %v1188_v21  ;;  %1702 = vmatmul.mubr.f32.gmra.mrb[4].mxu0 %v1399_v59  ;;  %2012 = vmatmul.mubr.f32.vlgmr.msra.gmra.mrb[16].mxu1 %v1393_v8  ;;  %v1423_v61 = vld [vmem:[#allocation5 + $0xf0] sm:$0xff]  ;;  %v1433_v21 = vld [vmem:[#allocation5 + $0x140] sm:$0xff]  ;;  %v1436_v14 = vld [vmem:[#allocation5 + $0x158] sm:$0xff] }
 0x1af   : > { %v3178_v57 = vpack.c.bf16 %v1224_v13, %v1110_v38  ;;  %3129 = vmatpush1.bf16.msra.mxu0 %v4708_v12  ;;  %3175 = vmatprep.subr.bf16.mxu1 %v3174_v17  ;;  %v1227_v34 = vsel %vm1221_vm2, %v5692_v47, %v3707_v4  ;;  %v1230_v8 = vsel %vm1221_vm2, %v5693_v24, %v3708_v10  ;;  %v1406_v12 = vld [vmem:[#allocation5 + $0x68] sm:$0xff]  ;;  %v1427_v6 = vld [vmem:[#allocation5 + $0x110] sm:$0xff]  ;;  %v1429_v4 = vld [vmem:[#allocation5 + $0x120] sm:$0xff] }
 0x1b0   : > { %3131 = vmatprep.subr.bf16.mxu0 %v4743_v7  ;;  %3177 = vmatpush3.bf16.msra.mxu1 %v3174_v17  ;;  %v3716_v20 = vpop.permute.xlu1 %3715  ;;  %v1405_v7 = vld [vmem:[#allocation5 + $0x60] sm:$0xff]  ;;  %v3182_v46 = vpack.c.bf16 %v1230_v8, %v1227_v34  ;;  %v1430_v10 = vld [vmem:[#allocation5 + $0x128] sm:$0xff]  ;;  %v1432_v17 = vld [vmem:[#allocation5 + $0x138] sm:$0xff] }
 0x1b1   : > { %v3711_v22 = vpop.permute.xlu0 %3710  ;;  %1707 = vmatprep.mubr.f32.mxu0 %v1403_v1  ;;  %2016 = vmatprep.mubr.f32.mxu1 %v1397_v44  ;;  %v3718_v32 = vunpack.i.h.bf16 %v3716_v20  ;;  %v3717_v62 = vunpack.i.l.bf16 %v3716_v20  ;;  %v5697_v44 = vunpack.i.h.bf16 %v4771_v56  ;;  %v1435_v38 = vld [vmem:[#allocation5 + $0x150] sm:$0xff]  ;;  %v1438_v13 = vld [vmem:[#allocation5 + $0x168] sm:$0xff]  ;;  %v1413_v24 = vld [vmem:[#allocation5 + $0xa0] sm:$0xff] }
 0x1b2   : > { %v3713_v35 = vunpack.i.h.bf16 %v3711_v22  ;;  %v3712_v40 = vunpack.i.l.bf16 %v3711_v22  ;;  %3179 = vmatprep.subr.bf16.mxu1 %v3178_v57  ;;  %1708 = vmatmul.mubr.f32.gmra.mrb[6].mxu0 %v1402_v60  ;;  %v1439_v0 = vld [vmem:[#allocation5 + $0x170] sm:$0xff]  ;;  %v1404_v22 = vld [vmem:[#allocation5 + $0x58] sm:$0xff]  ;;  %v1410_v34 = vld [vmem:[#allocation5 + $0x88] sm:$0xff] }
 0x1b3   : > { %2017 = vmatmul.mubr.f32.gmra.mrb[18].mxu1 %v1396_v45  ;;  %3133 = vmatpush1.bf16.msra.mxu0 %v4749_v18  ;;  %v1409_v18 = vld [vmem:[#allocation5 + $0x80] sm:$0xff]  ;;  %v1350_v36 = vsel %vm1347_vm5, %v5696_v9, %v3717_v62  ;;  %v1353_v45 = vsel %vm1347_vm5, %v5697_v44, %v3718_v32  ;;  %v1407_v47 = vld [vmem:[#allocation5 + $0x70] sm:$0xff]  ;;  %v1416_v8 = vld [vmem:[#allocation5 + $0xb8] sm:$0xff] }
 0x1b4   : > { %3135 = vmatprep.subr.bf16.mxu0 %v4781_v42  ;;  %3181 = vmatpush3.bf16.msra.mxu1 %v3178_v57  ;;  %v1233_v52 = vsel %vm1221_vm2, %v5694_v27, %v3712_v40  ;;  %v1236_v39 = vsel %vm1221_vm2, %v5695_v53, %v3713_v35  ;;  %v1408_v42 = vld [vmem:[#allocation5 + $0x78] sm:$0xff]  ;;  %v1346_v19 = vpop.permute.xlu1 %1345  ;;  %v1398_v57 = vld [vmem:[#allocation5 + $0x28] sm:$0xff]  ;;  %v5702_v35 = vld [vmem:[#allocation29_spill] sm:$0xff] }
 0x1b5   : > { %v3721_v49 = vpop.permute.xlu0 %3720  ;;  %1713 = vmatprep.mubr.f32.mxu0 %v1406_v12  ;;  %2021 = vmatprep.mubr.f32.mxu1 %v1400_v29  ;;  %v3186_v54 = vpack.c.bf16 %v1236_v39, %v1233_v52  ;;  %v1415_v29 = vld [vmem:[#allocation5 + $0xb0] sm:$0xff]  ;;  %v5701_v20 = vld [vmem:[#allocation28_spill] sm:$0xff]  ;;  %v5703_v40 = vld [vmem:[#allocation30_spill] sm:$0xff] }
 0x1b6   : > { %3183 = vmatprep.subr.bf16.mxu1 %v3182_v46  ;;  %1714 = vmatmul.mubr.f32.gmra.mrb[8].mxu0 %v1405_v7  ;;  %v3723_v63 = vunpack.i.h.bf16 %v3721_v49  ;;  %v3722_v3 = vunpack.i.l.bf16 %v3721_v49 }
 0x1b7   : > { %2022 = vmatmul.mubr.f32.gmra.mrb[20].mxu1 %v1399_v59  ;;  %3137 = vmatpush1.bf16.msra.mxu0 %v4790_v28  ;;  %v1412_v28 = vld [vmem:[#allocation5 + $0x98] sm:$0xff]  ;;  %v1362_v59 = vsel %vm1347_vm5, %v5700_v5, %v1346_v19 }
 0x1b8   : > { %3139 = vmatprep.subr.bf16.mxu0 %v4817_v37  ;;  %3185 = vmatpush3.bf16.msra.mxu1 %v3182_v46  ;;  %v3190_v37 = vpack.c.bf16 %v1353_v45, %v1350_v36  ;;  %v1356_v26 = vsel %vm1347_vm5, %v5698_v48, %v3722_v3  ;;  %v1359_v56 = vsel %vm1347_vm5, %v5699_v41, %v3723_v63 }
 0x1b9   : > { %1719 = vmatprep.mubr.f32.mxu0 %v1409_v18  ;;  %2026 = vmatprep.mubr.f32.mxu1 %v1403_v1  ;;  %v1395_v1 = vld [vmem:[#allocation5 + $0x10] sm:$0xff] }
 0x1ba   : > { %3187 = vmatprep.subr.bf16.mxu1 %v3186_v54  ;;  %1720 = vmatmul.mubr.f32.gmra.mrb[10].mxu0 %v1408_v42 }
 0x1bb   : > { %2027 = vmatmul.mubr.f32.gmra.mrb[22].mxu1 %v1402_v60  ;;  %3141 = vmatpush1.bf16.msra.mxu0 %v4826_v16  ;;  %v3194_v16 = vpack.c.bf16 %v1359_v56, %v1356_v26  ;;  %v1401_v60 = vld [vmem:[#allocation5 + $0x40] sm:$0xff] }
 0x1bc   : > { %1810 = vmatprep.subr.mxu0 %v4845_v31  ;;  %3189 = vmatpush3.bf16.msra.mxu1 %v3186_v54  ;;  %v1414_v31 = vld [vmem:[#allocation5 + $0xa8] sm:$0xff] }
 0x1bd   : > { %1725 = vmatprep.mubr.f32.mxu0 %v1412_v28  ;;  %2031 = vmatprep.mubr.f32.mxu1 %v1406_v12 }
 0x1be   : > { %3191 = vmatprep.subr.bf16.mxu1 %v3190_v37  ;;  %1726 = vmatmul.mubr.f32.gmra.mrb[12].mxu0 %v1411_v15 }
 0x1bf   : > { %2032 = vmatmul.mubr.f32.gmra.mrb[24].mxu1 %v1405_v7  ;;  %1811 = vmatpush1.msra.mxu0 %v4857_v30  ;;  %v1420_v30 = vld [vmem:[#allocation5 + $0xd8] sm:$0xff] }
 0x1c0   : > { %3193 = vmatpush3.bf16.msra.mxu1 %v3190_v37  ;;  %1731 = vmatprep.mubr.f32.mxu0 %v1415_v29 }
 0x1c1   : > { %2036 = vmatprep.mubr.f32.mxu1 %v1409_v18  ;;  %3195 = vmatprep.subr.bf16.mxu1 %v3194_v16 }
 0x1c2   : > { %1732 = vmatmul.mubr.f32.gmra.mrb[14].mxu0 %v1414_v31 }
 0x1c3   : > { %2037 = vmatmul.mubr.f32.gmra.mrb[26].mxu1 %v1408_v42  ;;  %1737 = vmatprep.mubr.f32.mxu0 %v1418_v43 }
 0x1c4   : > { %3197 = vmatpush3.bf16.msra.mxu1 %v3194_v16  ;;  %2041 = vmatprep.mubr.f32.mxu1 %v1412_v28 }
 0x1c5   : > { %3028 = vmatprep.subr.mxu1 %v1362_v59 }
 0x1c6   : > { %1738 = vmatmul.mubr.f32.gmra.mrb[16].mxu0 %v1417_v23 }
 0x1c7   : > { %2042 = vmatmul.mubr.f32.gmra.mrb[28].mxu1 %v1411_v15  ;;  %1743 = vmatprep.mubr.f32.mxu0 %v1421_v25 }
 0x1c8   : > { %3029 = vmatpush3.msra.mxu1 %v1362_v59  ;;  %2046 = vmatprep.mubr.f32.mxu1 %v1415_v29 }
 0x1ca   : > { %1744 = vmatmul.mubr.f32.gmra.mrb[18].mxu0 %v1420_v30 }
 0x1cb   : > { %2047 = vmatmul.mubr.f32.gmra.mrb[30].mxu1 %v1414_v31  ;;  %1749 = vmatprep.mubr.f32.mxu0 %v1424_v11 }
 0x1cc   : > { %2051 = vmatprep.mubr.f32.mxu1 %v1418_v43 }
 0x1ce   : > { %1750 = vmatmul.mubr.f32.gmra.mrb[20].mxu0 %v1423_v61 }
 0x1cf   : > { %2052 = vmatmul.mubr.f32.gmra.mrb[32].mxu1 %v1417_v23  ;;  %1755 = vmatprep.mubr.f32.mxu0 %v1427_v6 }
 0x1d0   : > { %2056 = vmatprep.mubr.f32.mxu1 %v1421_v25 }
 0x1d2   : > { %1756 = vmatmul.mubr.f32.gmra.mrb[22].mxu0 %v1426_v58 }
 0x1d3   : > { %2057 = vmatmul.mubr.f32.gmra.mrb[34].mxu1 %v1420_v30  ;;  %1761 = vmatprep.mubr.f32.mxu0 %v1430_v10 }
 0x1d4   : > { %2061 = vmatprep.mubr.f32.mxu1 %v1424_v11 }
 0x1d6   : > { %1762 = vmatmul.mubr.f32.gmra.mrb[24].mxu0 %v1429_v4 }
 0x1d7   : > { %2062 = vmatmul.mubr.f32.gmra.mrb[36].mxu1 %v1423_v61  ;;  %1767 = vmatprep.mubr.f32.mxu0 %v1433_v21 }
 0x1d8   : > { %2066 = vmatprep.mubr.f32.mxu1 %v1427_v6 }
 0x1da   : > { %1768 = vmatmul.mubr.f32.gmra.mrb[26].mxu0 %v1432_v17 }
 0x1db   : > { %2067 = vmatmul.mubr.f32.gmra.mrb[38].mxu1 %v1426_v58  ;;  %1773 = vmatprep.mubr.f32.mxu0 %v1436_v14 }
 0x1dc   : > { %2071 = vmatprep.mubr.f32.mxu1 %v1430_v10 }
 0x1de   : > { %1774 = vmatmul.mubr.f32.gmra.mrb[28].mxu0 %v1435_v38 }
 0x1df   : > { %2072 = vmatmul.mubr.f32.gmra.mrb[40].mxu1 %v1429_v4  ;;  %1779 = vmatprep.mubr.f32.mxu0 %v1439_v0 }
 0x1e0   : > { %2076 = vmatprep.mubr.f32.mxu1 %v1433_v21 }
 0x1e2   : > { %1780 = vmatmul.mubr.f32.gmra.mrb[30].mxu0 %v1438_v13 }
 0x1e3   : > { %2077 = vmatmul.mubr.f32.gmra.mrb[42].mxu1 %v1432_v17  ;;  %1850 = vmatprep.mubr.f32.mxu0 %v5673_v51 }
 0x1e4   : > { %2081 = vmatprep.mubr.f32.mxu1 %v1436_v14 }
 0x1e6   : > { %2855 = vmatmul.mubr.msk.f32.vlgmr.msra.gmra.mrb[0].mxu0 %vm1576_vm6, %v1395_v1 }
 0x1e7   : > { %2082 = vmatmul.mubr.f32.gmra.mrb[44].mxu1 %v1435_v38  ;;  %1856 = vmatprep.mubr.f32.mxu0 %v5673_v51 }
 0x1e8   : > { %2086 = vmatprep.mubr.f32.mxu1 %v1439_v0 }
 0x1ea   : > { %2856 = vmatmul.mubr.msk.f32.gmra.mrb[2].mxu0 %vm1576_vm6, %v1398_v57 }
 0x1eb   : > { %2087 = vmatmul.mubr.f32.gmra.mrb[46].mxu1 %v1438_v13  ;;  %1862 = vmatprep.mubr.f32.mxu0 %v5673_v51 }
 0x1ec   : > { %3030 = vmatprep.mubr.msk.f32.mxu1 %vm1576_vm6, %v1395_v1 }
 0x1ee   : > { %2857 = vmatmul.mubr.msk.f32.gmra.mrb[4].mxu0 %vm1576_vm6, %v1401_v60 }
 0x1ef   : > { %3031 = vmatmul.mubr.msk.f32.vlgmr.msra.gmra.mrb[48].mxu1 %vm1576_vm6, %v1398_v57  ;;  %1868 = vmatprep.mubr.f32.mxu0 %v5673_v51 }
 0x1f0   : > { %3033 = vmatprep.mubr.msk.f32.mxu1 %vm1576_vm6, %v1401_v60 }
 0x1f2   : > { %2858 = vmatmul.mubr.msk.f32.gmra.mrb[6].mxu0 %vm1576_vm6, %v1404_v22 }
 0x1f3   : > { %3034 = vmatmul.mubr.msk.f32.gmra.mrb[50].mxu1 %vm1576_vm6, %v1404_v22  ;;  %1874 = vmatprep.mubr.f32.mxu0 %v5673_v51 }
 0x1f4   : > { %3036 = vmatprep.mubr.msk.f32.mxu1 %vm1576_vm6, %v1407_v47 }
 0x1f6   : > { %2859 = vmatmul.mubr.msk.f32.gmra.mrb[8].mxu0 %vm1576_vm6, %v1407_v47 }
 0x1f7   : > { %3037 = vmatmul.mubr.msk.f32.gmra.mrb[52].mxu1 %vm1576_vm6, %v1410_v34  ;;  %1880 = vmatprep.mubr.f32.mxu0 %v5673_v51 }
 0x1f8   : > { %3039 = vmatprep.mubr.msk.f32.mxu1 %vm1576_vm6, %v1413_v24 }
 0x1fa   : > { %2860 = vmatmul.mubr.msk.f32.gmra.mrb[10].mxu0 %vm1576_vm6, %v1410_v34 }
 0x1fb   : > { %3040 = vmatmul.mubr.msk.f32.gmra.mrb[54].mxu1 %vm1576_vm6, %v1416_v8  ;;  %1886 = vmatprep.mubr.f32.mxu0 %v5673_v51 }
 0x1fc   : > { %3042 = vmatprep.mubr.msk.f32.mxu1 %vm1576_vm6, %v5701_v20 }
 0x1fe   : > { %2861 = vmatmul.mubr.msk.f32.gmra.mrb[12].mxu0 %vm1576_vm6, %v1413_v24 }
 0x1ff   : > { %3043 = vmatmul.mubr.msk.f32.gmra.mrb[56].mxu1 %vm1576_vm6, %v4865_v55  ;;  %1892 = vmatprep.mubr.f32.mxu0 %v5673_v51  ;;  %v5704_v55 = vld [vmem:[#allocation31_spill] sm:$0xff] }
 0x200   : > { %3045 = vmatprep.mubr.msk.f32.mxu1 %vm1576_vm6, %v4878_v33 }
 0x202   : > { %2862 = vmatmul.mubr.msk.f32.gmra.mrb[14].mxu0 %vm1576_vm6, %v1416_v8 }
 0x203   : > { %3046 = vmatmul.mubr.msk.f32.gmra.mrb[58].mxu1 %vm1576_vm6, %v4889_v50 }
 0x204   : > { %3048 = vmatprep.mubr.msk.f32.mxu1 %vm1576_vm6, %v5702_v35 }
 0x207   : > { %3049 = vmatmul.mubr.msk.f32.gmra.mrb[60].mxu1 %vm1576_vm6, %v5703_v40  ;;  %v5128_v41 = vpop.permute.xlu1 %2268 }
 0x208   : > { %3051 = vmatprep.mubr.msk.f32.mxu1 %vm1576_vm6, %v4922_v2 }
 0x209   : > { %v5130_v29 = vpop.permute.xlu0 %2263 }
 0x20b   : > { %3052 = vmatmul.mubr.msk.f32.gmra.mrb[62].mxu1 %vm1576_vm6, %v5704_v55  ;;  %v5134_v19 = vpop.permute.xlu1 %2273 }
 0x20d   : > { %v5138_v59 = vpop.permute.xlu0 %2278 }
 0x20f   : > { %v5142_v4 = vpop.permute.xlu1 %2355 }
 0x211   : > { %v5144_v0 = vpop.permute.xlu0 %2360 }
 0x213   : > { %v5148_v24 = vpop.permute.xlu1 %2365 }
 0x215   : > { %v5152_v40 = vpop.permute.xlu0 %2370 }
 0x23f   : > { %v1900_v51 = vpop.f32.mrb[0].mxu1 }
 0x240   : > { %v1902_v12 = vpop.f32.mrb[1].mxu1 }
 0x243   : > { %v1906_v33 = vpop.f32.mrb[2].mxu1 }
 0x244   : > { %v1908_v7 = vpop.f32.mrb[3].mxu1 }
 0x247   : > { %v1912_v46 = vpop.f32.mrb[4].mxu1 }
 0x248   : > { %v1914_v32 = vpop.f32.mrb[5].mxu1 }
 0x24b   : > { %v1918_v62 = vpop.f32.mrb[6].mxu1 }
 0x24c   : > { %v1920_v50 = vpop.f32.mrb[7].mxu1 }
 0x24f   : > { %v5104_v49 = vpop.f32.mrb[8].mxu1 }
 0x250   : > { %v5106_v27 = vpop.f32.mrb[9].mxu1 }
 0x254   : > { %v5108_v52 = vpop.f32.mrb[10].mxu1 }
 0x255   : > { %v5110_v53 = vpop.f32.mrb[11].mxu1 }
 0x258   : > { %v5112_v2 = vpop.f32.mrb[12].mxu1 }
 0x259   : > { %v5114_v39 = vpop.f32.mrb[13].mxu1 }
 0x25c   : > { %v5116_v18 = vpop.f32.mrb[14].mxu1 }
 0x25d   : > { %v5118_v42 = vpop.f32.mrb[15].mxu1 }
 0x281   : > { %v2927_v63 = vpop.f32.mrb[16].mxu1 }
 0x282   : > { %v2928_v3 = vpop.f32.mrb[17].mxu1 }
 0x283   : > { %v5120_v54 = vadd.f32 %v2928_v3, %v2927_v63  ;;  %v5161_v3 = vld [vmem:[%s4350_s12] sm:$0xff] }
 0x286   : > { %v2930_v9 = vpop.f32.mrb[18].mxu1 }
 0x287   : > { %v2931_v36 = vpop.f32.mrb[19].mxu1 }
 0x288   : > { %v5122_v44 = vadd.f32 %v2931_v36, %v2930_v9  ;;  %v5166_v36 = vld [vmem:[%s4350_s12 + $0x8] sm:$0xff] }
 0x28a   : > { %v2933_v45 = vpop.f32.mrb[20].mxu1 }
 0x28b   : > { %v2934_v28 = vpop.f32.mrb[21].mxu1 }
 0x28c   : > { %v5124_v15 = vadd.f32 %v2934_v28, %v2933_v45 }
 0x28e   : > { %v2936_v37 = vpop.f32.mrb[22].mxu1 }
 0x28f   : > { %v2937_v48 = vpop.f32.mrb[23].mxu1 }
 0x290   : > { %v5126_v26 = vadd.f32 %v2937_v48, %v2936_v37  ;;  %v5172_v37 = vld [vmem:[%s4350_s12 + $0x18] sm:$0xff] }
 0x292   : > { %v2939_v56 = vpop.f32.mrb[24].mxu1 }
 0x293   : > { %v2940_v16 = vpop.f32.mrb[25].mxu1 }
 0x294   : > { %v5132_v31 = vadd.f32 %v2940_v16, %v2939_v56 }
 0x296   : > { %v2942_v43 = vpop.f32.mrb[26].mxu1 }
 0x297   : > { %v2943_v23 = vpop.f32.mrb[27].mxu1 }
 0x298   : > { %v5136_v5 = vadd.f32 %v2943_v23, %v2942_v43  ;;  %v5182_v43 = vld [vmem:[%s4350_s12 + $0x20] sm:$0xff] }
 0x299   : > { %v1739_v25 = vpop.f32.mrb[16].mxu0  ;;  %5705 = vst [vmem:[#allocation27_spill] sm:$0xff] %v5182_v43 }
 0x29a   : > { %v1901_v30 = vadd.f32 %v1900_v51, %v1739_v25  ;;  %v1741_v11 = vpop.f32.mrb[17].mxu0  ;;  %v2945_v61 = vpop.f32.mrb[28].mxu1  ;;  %v5189_v25 = vld [vmem:[%s4350_s12 + $0x30] sm:$0xff] }
 0x29b   : > { %v1903_v6 = vadd.f32 %v1902_v12, %v1741_v11  ;;  %v2946_v58 = vpop.f32.mrb[29].mxu1 }
 0x29c   : > { %v5140_v10 = vadd.f32 %v2946_v58, %v2945_v61  ;;  %v5196_v58 = vld [vmem:[%s4350_s12 + $0x38] sm:$0xff] }
 0x29d   : > { %v1745_v21 = vpop.f32.mrb[18].mxu0 }
 0x29e   : > { %v1907_v17 = vadd.f32 %v1906_v33, %v1745_v21  ;;  %v1747_v14 = vpop.f32.mrb[19].mxu0  ;;  %v2948_v38 = vpop.f32.mrb[30].mxu1 }
 0x29f   : > { %v1909_v13 = vadd.f32 %v1908_v7, %v1747_v14  ;;  %v2949_v1 = vpop.f32.mrb[31].mxu1 }
 0x2a0   : > { %v5146_v57 = vadd.f32 %v2949_v1, %v2948_v38 }
 0x2a1   : > { %v1751_v60 = vpop.f32.mrb[20].mxu0 }
 0x2a2   : > { %v1913_v22 = vadd.f32 %v1912_v46, %v1751_v60  ;;  %v1753_v47 = vpop.f32.mrb[21].mxu0  ;;  %v2951_v34 = vpop.f32.mrb[32].mxu1 }
 0x2a3   : > { %v1915_v8 = vadd.f32 %v1914_v32, %v1753_v47  ;;  %v2952_v20 = vpop.f32.mrb[33].mxu1  ;;  %v5163_v32 = vpop.permute.xlu1 %2447 }
 0x2a4   : > { %v5150_v35 = vadd.f32 %v2952_v20, %v2951_v34  ;;  %v2465_v16 = vmul.f32 %v5163_v32, %v5161_v3 }
 0x2a5   : > { %v1757_v55 = vpop.f32.mrb[22].mxu0 }
 0x2a6   : > { %v5154_v51 = vadd.f32 %v1918_v62, %v1757_v55  ;;  %v1759_v12 = vpop.f32.mrb[23].mxu0  ;;  %v2954_v33 = vpop.f32.mrb[34].mxu1  ;;  %v2477_v34 = vadd.f32 %v2465_v16, %v1901_v30 }
 0x2a7   : > { %v5156_v7 = vadd.f32 %v1920_v50, %v1759_v12  ;;  %v2955_v46 = vpop.f32.mrb[35].mxu1  ;;  %v5174_v50 = vpop.permute.xlu0 %2452 }
 0x2a8   : > { %v5158_v63 = vadd.f32 %v2955_v46, %v2954_v33  ;;  %v5191_v11 = vpop.permute.xlu1 %2457  ;;  %v2469_v1 = vmul.f32 %v5174_v50, %v5182_v43  ;;  %v2489_v16 = vmul.f32 0.5, %v2477_v34 }
 0x2a9   : > { %v1763_v9 = vpop.f32.mrb[24].mxu0  ;;  %v2471_v20 = vmul.f32 %v5191_v11, %v5189_v25 }
 0x2aa   : > { %v5169_v62 = vadd.f32 %v5104_v49, %v1763_v9  ;;  %v1765_v45 = vpop.f32.mrb[25].mxu0  ;;  %v2957_v28 = vpop.f32.mrb[36].mxu1  ;;  %v2466_v49 = vmul.f32 %v5163_v32, %v5166_v36  ;;  %3726 = vtanh.f32 %v2489_v16 }
 0x2ab   : > { %v5177_v48 = vadd.f32 %v5106_v27, %v1765_v45  ;;  %v2958_v56 = vpop.f32.mrb[37].mxu1  ;;  %v2468_v27 = vmul.f32 %v5174_v50, %v5172_v37 }
 0x2ac   : > { %v5184_v23 = vadd.f32 %v2958_v56, %v2957_v28  ;;  %v2478_v12 = vadd.f32 %v2466_v49, %v1903_v6 }
 0x2ad   : > { %v1769_v61 = vpop.f32.mrb[26].mxu0  ;;  %v2480_v46 = vadd.f32 %v2468_v27, %v1907_v17 }
 0x2ae   : > { %5706 = vst [vmem:[#allocation28_spill] sm:$0xff] %v5184_v23  ;;  %v5199_v21 = vadd.f32 %v5108_v52, %v1769_v61  ;;  %v1771_v14 = vpop.f32.mrb[27].mxu0  ;;  %v2960_v38 = vpop.f32.mrb[38].mxu1  ;;  %v2472_v52 = vmul.f32 %v5191_v11, %v5196_v58  ;;  %v2483_v61 = vadd.f32 %v2471_v20, %v1913_v22  ;;  %v2490_v6 = vmul.f32 0.5, %v2478_v12  ;;  %v5233_v12 = vld [vmem:[%s4350_s12 + $0x48] sm:$0xff] }
 0x2af   : > { %v5204_v60 = vadd.f32 %v5110_v53, %v1771_v14  ;;  %v2961_v47 = vpop.f32.mrb[39].mxu1  ;;  %v2481_v53 = vadd.f32 %v2469_v1, %v1909_v13 }
 0x2b0   : > { %v5208_v55 = vadd.f32 %v2961_v47, %v2960_v38  ;;  %v2484_v49 = vadd.f32 %v2472_v52, %v1915_v8  ;;  %v2492_v47 = vmul.f32 0.5, %v2480_v46  ;;  %v2282_v8 = vmul.f32 %v5130_v29, %v5166_v36  ;;  %v5235_v52 = vpop.permute.xlu0 %2462  ;;  %v5238_v46 = vld [vmem:[%s4350_s12 + $0x28] sm:$0xff] }
 0x2b1   : > { %v1775_v33 = vpop.f32.mrb[28].mxu0  ;;  %v2493_v13 = vmul.f32 0.5, %v2481_v53  ;;  %v2495_v34 = vmul.f32 0.5, %v2483_v61  ;;  %3728 = vtanh.f32 %v2490_v6  ;;  %5709 = vst [vmem:[#allocation31_spill] sm:$0xff] %v5238_v46  ;;  %v2284_v53 = vmul.f32 %v5128_v41, %v5172_v37 }
 0x2b2   : > { %v5213_v9 = vadd.f32 %v5112_v2, %v1775_v33  ;;  %v1777_v45 = vpop.f32.mrb[29].mxu0  ;;  %v2963_v28 = vpop.f32.mrb[40].mxu1  ;;  %3730 = vtanh.f32 %v2492_v47  ;;  %v2285_v6 = vmul.f32 %v5128_v41, %v5182_v43 }
 0x2b3   : > { %v5216_v56 = vadd.f32 %v5114_v39, %v1777_v45  ;;  %v2964_v30 = vpop.f32.mrb[41].mxu1  ;;  %v2281_v39 = vmul.f32 %v5130_v29, %v5161_v3  ;;  %3732 = vtanh.f32 %v2493_v13 }
 0x2b4   : > { %v5218_v14 = vadd.f32 %v2964_v30, %v2963_v28  ;;  %v5243_v30 = vld [vmem:[%s4350_s12 + $0x40] sm:$0xff]  ;;  %3734 = vtanh.f32 %v2495_v34 }
 0x2b5   : > { %v1781_v38 = vpop.f32.mrb[30].mxu0 }
 0x2b6   : > { %5707 = vst [vmem:[#allocation29_spill] sm:$0xff] %v5218_v14  ;;  %v5221_v17 = vadd.f32 %v5116_v18, %v1781_v38  ;;  %v1783_v2 = vpop.f32.mrb[31].mxu0  ;;  %v2966_v27 = vpop.f32.mrb[42].mxu1  ;;  %v2496_v18 = vmul.f32 0.5, %v2484_v49  ;;  %v5248_v49 = vld [vmem:[%s4350_s12 + $0x10] sm:$0xff]  ;;  %v2474_v38 = vmul.f32 %v5235_v52, %v5233_v12 }
 0x2b7   : > { %v5226_v1 = vadd.f32 %v5118_v42, %v1783_v2  ;;  %v2967_v22 = vpop.f32.mrb[43].mxu1  ;;  %5710 = vst [vmem:[#allocation32_spill] sm:$0xff] %v5248_v49 }
 0x2b8   : > { %v5230_v20 = vadd.f32 %v2967_v22, %v2966_v27  ;;  %v5256_v27 = vmul.f32 %v5128_v41, %v5238_v46  ;;  %3736 = vtanh.f32 %v2496_v18  ;;  %v5260_v22 = vmul.f32 %v5134_v19, %v5243_v30 }
 0x2b9   : > { %v1852_v33 = vpop.f32.mrb[0].mxu0  ;;  %v5269_v41 = vmul.f32 %v5130_v29, %v5248_v49 }
 0x2ba   : > { %5708 = vst [vmem:[#allocation30_spill] sm:$0xff] %v5230_v20  ;;  %v2293_v42 = vadd.f32 %v2281_v39, %v1852_v33  ;;  %v1854_v45 = vpop.f32.mrb[1].mxu0  ;;  %v2969_v28 = vpop.f32.mrb[44].mxu1 }
 0x2bb   : > { %v2294_v16 = vadd.f32 %v2282_v8, %v1854_v45  ;;  %v2970_v61 = vpop.f32.mrb[45].mxu1  ;;  %v5263_v8 = vld [vmem:[%s4350_s12 + $0x58] sm:$0xff] }
 0x2bc   : > { %v2305_v47 = vmul.f32 0.5, %v2293_v42  ;;  %v5252_v2 = vadd.f32 %v2970_v61, %v2969_v28  ;;  %v2287_v42 = vmul.f32 %v5134_v19, %v5189_v25  ;;  %v2486_v61 = vadd.f32 %v2474_v38, %v5154_v51 }
 0x2bd   : > { %v2306_v39 = vmul.f32 0.5, %v2294_v16  ;;  %v1858_v13 = vpop.f32.mrb[2].mxu0  ;;  %v2288_v16 = vmul.f32 %v5134_v19, %v5196_v58  ;;  %v5283_v29 = vmul.f32 %v5138_v59, %v5263_v8  ;;  %v5286_v19 = vpop.eup %3726  ;;  %v5290_v51 = vmul.f32 %v5148_v24, %v5243_v30 }
 0x2be   : > { %5711 = vst [vmem:[#allocation33_spill] sm:$0xff] %v5252_v2  ;;  %3738 = vtanh.f32 %v2305_v47  ;;  %v2296_v34 = vadd.f32 %v2284_v53, %v1858_v13  ;;  %v1860_v33 = vpop.f32.mrb[3].mxu0  ;;  %v2972_v45 = vpop.f32.mrb[46].mxu1  ;;  %v5279_v13 = vmul.f32 %v5142_v4, %v5248_v49 }
 0x2bf   : > { %3740 = vtanh.f32 %v2306_v39  ;;  %v2297_v18 = vadd.f32 %v2285_v6, %v1860_v33  ;;  %v2973_v28 = vpop.f32.mrb[47].mxu1 }
 0x2c0   : > { %3742 = vtanh.f32 %v5169_v62  ;;  %v2308_v53 = vmul.f32 0.5, %v2296_v34  ;;  %v5275_v47 = vadd.f32 %v2973_v28, %v2972_v45  ;;  %v5293_v62 = vld [vmem:[%s4350_s12 + $0x50] sm:$0xff]  ;;  %v2290_v45 = vmul.f32 %v5138_v59, %v5233_v12  ;;  %v5297_v28 = vpop.eup %3728  ;;  %s3247_s12 = smul.u32 1536, %s4072_s21 }
 0x2c1   : > { %3744 = vtanh.f32 %v5177_v48  ;;  %v2309_v6 = vmul.f32 0.5, %v2297_v18  ;;  %v1864_v39 = vpop.f32.mrb[4].mxu0  ;;  %v5304_v14 = vpop.eup %3730 }
 0x2c2   : > { %5712 = vst [vmem:[#allocation34_spill] sm:$0xff] %v5275_v47  ;;  %3746 = vtanh.f32 %v2308_v53  ;;  %v2299_v38 = vadd.f32 %v2287_v42, %v1864_v39  ;;  %v3032_v34 = vpop.f32.mrb[48].mxu1  ;;  %v1866_v33 = vpop.f32.mrb[5].mxu0  ;;  %v2291_v47 = vmul.f32 %v5138_v59, %v5293_v62  ;;  %v2498_v53 = vmul.f32 0.5, %v2486_v61  ;;  %s5498_s27 = scalar_lea.hbm %s5603_s5, %s3247_s12 }
 0x2c3   : > { %3748 = vtanh.f32 %v2309_v6  ;;  %v5300_v48 = vadd.f32 %v3032_v34, %v5122_v44  ;;  %v2300_v18 = vadd.f32 %v2288_v16, %v1866_v33  ;;  %v2158_v2 = vpop.f32.mrb[49].mxu1  ;;  %v5310_v20 = vpop.eup %3732  ;;  %v5314_v44 = vmul.f32 %v5144_v0, %v5238_v46 }
 0x2c4   : > { %3750 = vtanh.f32 %v5199_v21  ;;  %v2311_v42 = vmul.f32 0.5, %v2299_v38  ;;  %v5308_v39 = vadd.f32 %v5120_v54, %v2158_v2  ;;  %5713 = vst [vmem:[#allocation35_spill] sm:$0xff] %v5310_v20  ;;  %v2475_v16 = vmul.f32 %v5235_v52, %v5293_v62  ;;  %v5319_v61 = vpop.eup %3734 }
 0x2c5   : > { %3752 = vtanh.f32 %v5204_v60  ;;  %v2312_v59 = vmul.f32 0.5, %v2300_v18  ;;  %v1870_v6 = vpop.f32.mrb[6].mxu0  ;;  %5714 = vst [vmem:[#allocation36_spill] sm:$0xff] %v5319_v61  ;;  %v5323_v21 = vmul.f32 %v5163_v32, %v5248_v49  ;;  %v2373_v34 = vmul.f32 %v5142_v4, %v5161_v3  ;;  %v5327_v33 = vpop.eup %3736 }
 0x2c6   : > { %3754 = vtanh.f32 %v2311_v42  ;;  %v2302_v54 = vadd.f32 %v2290_v45, %v1870_v6  ;;  %v3035_v2 = vpop.f32.mrb[50].mxu1  ;;  %v1872_v38 = vpop.f32.mrb[7].mxu0  ;;  %5716 = vst [vmem:[#allocation38_spill] sm:$0xff] %v5327_v33  ;;  %v5331_v60 = vmul.f32 %v5152_v40, %v5263_v8  ;;  %v5336_v45 = vmul.f32 %v5174_v50, %v5238_v46 }
 0x2c7   : > { %5715 = vst [vmem:[#allocation37_spill] sm:$0xff] %v5323_v21  ;;  %3756 = vtanh.f32 %v2312_v59  ;;  %v2174_v18 = vadd.f32 %v3035_v2, %v5126_v26  ;;  %v2303_v61 = vadd.f32 %v2291_v47, %v1872_v38  ;;  %v2168_v23 = vpop.f32.mrb[51].mxu1  ;;  %v2487_v21 = vadd.f32 %v2475_v16, %v5156_v7 }
 0x2c8   : > { %v3739_v32 = vpop.eup %3738  ;;  %5717 = vst [vmem:[#allocation39_spill] sm:$0xff] %v5336_v45  ;;  %3758 = vtanh.f32 %v2498_v53  ;;  %v2314_v42 = vmul.f32 0.5, %v2302_v54  ;;  %v5339_v6 = vadd.f32 %v5124_v15, %v2168_v23  ;;  %v2374_v53 = vmul.f32 %v5142_v4, %v5166_v36 }
 0x2c9   : > { %v3741_v49 = vpop.eup %3740  ;;  %3760 = vtanh.f32 %v5213_v9  ;;  %v2329_v59 = vadd.f32 1.0, %v3739_v32  ;;  %v2315_v33 = vmul.f32 0.5, %v2303_v61  ;;  %v1876_v26 = vpop.f32.mrb[8].mxu0  ;;  %v2376_v9 = vmul.f32 %v5144_v0, %v5172_v37 }
 0x2ca   : > { %v3743_v47 = vpop.eup %3742  ;;  %3762 = vtanh.f32 %v5216_v56  ;;  %v2330_v2 = vadd.f32 1.0, %v3741_v49  ;;  %v2385_v38 = vadd.f32 %v2373_v34, %v1876_v26  ;;  %v3038_v50 = vpop.f32.mrb[52].mxu1  ;;  %v2377_v49 = vmul.f32 %v5144_v0, %v5182_v43 }
 0x2cb   : > { %v1878_v46 = vpop.f32.mrb[9].mxu0  ;;  %v3745_v15 = vpop.eup %3744  ;;  %v2341_v23 = vmul.f32 0.5, %v2329_v59  ;;  %3764 = vtanh.f32 %v2314_v42  ;;  %v2184_v7 = vadd.f32 %v3038_v50, %v5136_v5  ;;  %v2499_v32 = vmul.f32 0.5, %v2487_v21 }
 0x2cc   : > { %v2178_v16 = vpop.f32.mrb[53].mxu1  ;;  %v3747_v61 = vpop.eup %3746  ;;  %v2342_v54 = vmul.f32 0.5, %v2330_v2  ;;  %3766 = vtanh.f32 %v2315_v33  ;;  %v2397_v56 = vmul.f32 0.5, %v2385_v38  ;;  %v2386_v2 = vadd.f32 %v2374_v53, %v1878_v46 }
 0x2cd   : > { %v3749_v34 = vpop.eup %3748  ;;  %3768 = vtanh.f32 %v5221_v17  ;;  %v5352_v4 = vmul.f32 %v3743_v47, %v2341_v23  ;;  %v2332_v42 = vadd.f32 1.0, %v3747_v61  ;;  %v1882_v59 = vpop.f32.mrb[10].mxu0  ;;  %v2298_v0 = vadd.f32 %v5256_v27, %v5300_v48 }
 0x2ce   : > { %v3751_v5 = vpop.eup %3750  ;;  %3770 = vtanh.f32 %v5226_v1  ;;  %v5355_v26 = vmul.f32 %v3745_v15, %v2342_v54  ;;  %v2333_v50 = vadd.f32 1.0, %v3749_v34  ;;  %v3041_v33 = vpop.f32.mrb[54].mxu1  ;;  %v2179_v17 = vadd.f32 %v5132_v31, %v2178_v16 }
 0x2cf   : > { %v1884_v38 = vpop.f32.mrb[11].mxu0  ;;  %v3753_v20 = vpop.eup %3752  ;;  %v2344_v45 = vmul.f32 0.5, %v2332_v42  ;;  %3772 = vtanh.f32 %v2397_v56  ;;  %v2398_v61 = vmul.f32 0.5, %v2386_v2  ;;  %v2388_v43 = vadd.f32 %v2376_v9, %v1882_v59 }
 0x2d0   : > { %v2188_v21 = vpop.f32.mrb[55].mxu1  ;;  %v3755_v47 = vpop.eup %3754  ;;  %v2345_v23 = vmul.f32 0.5, %v2333_v50  ;;  %v2194_v1 = vadd.f32 %v3041_v33, %v5146_v57  ;;  %v2295_v53 = vadd.f32 %v5269_v41, %v5308_v39  ;;  %v2304_v34 = vadd.f32 %v5283_v29, %v2174_v18 }
 0x2d1   : > { %v3757_v15 = vpop.eup %3756  ;;  %v5361_v54 = vmul.f32 %v3751_v5, %v2344_v45  ;;  %v2335_v46 = vadd.f32 1.0, %v3755_v47  ;;  %v1888_v27 = vpop.f32.mrb[12].mxu0  ;;  %3774 = vtanh.f32 %v2398_v61  ;;  %v2400_v56 = vmul.f32 0.5, %v2388_v43 }
 0x2d2   : > { %v5366_v48 = vpop.eup %3758  ;;  %v5368_v31 = vmul.f32 %v3753_v20, %v2345_v23  ;;  %v2336_v16 = vadd.f32 1.0, %v3757_v15  ;;  %v3044_v9 = vpop.f32.mrb[56].mxu1  ;;  %v2310_v45 = vmul.f32 0.5, %v2298_v0  ;;  %v2390_v5 = vadd.f32 %v5314_v44, %v2184_v7 }
 0x2d3   : > { %v1890_v42 = vpop.f32.mrb[13].mxu0  ;;  %v3761_v57 = vpop.eup %3760  ;;  %v2347_v59 = vmul.f32 0.5, %v2335_v46  ;;  %v2389_v50 = vadd.f32 %v2377_v49, %v1884_v38  ;;  %3776 = vtanh.f32 %v2400_v56  ;;  %v2189_v29 = vadd.f32 %v5140_v10, %v2188_v21 }
 0x2d4   : > { %v2198_v2 = vpop.f32.mrb[57].mxu1  ;;  %v3763_v41 = vpop.eup %3762  ;;  %v2348_v39 = vmul.f32 0.5, %v2336_v16  ;;  %v2379_v20 = vmul.f32 %v5148_v24, %v5189_v25  ;;  %3778 = vtanh.f32 %v2499_v32  ;;  %v2307_v33 = vmul.f32 0.5, %v2295_v53 }
 0x2d5   : > { %v3765_v18 = vpop.eup %3764  ;;  %v5374_v43 = vmul.f32 %v3761_v57, %v2347_v59  ;;  %v2380_v0 = vmul.f32 %v5148_v24, %v5196_v58  ;;  %v1894_v47 = vpop.f32.mrb[14].mxu0  ;;  %v2316_v38 = vmul.f32 0.5, %v2304_v34  ;;  %v2401_v23 = vmul.f32 0.5, %v2389_v50 }
 0x2d6   : > { %v3767_v44 = vpop.eup %3766  ;;  %v5378_v7 = vmul.f32 %v3763_v41, %v2348_v39  ;;  %v2338_v49 = vadd.f32 1.0, %v3765_v18  ;;  %v3047_v61 = vpop.f32.mrb[58].mxu1  ;;  %3780 = vtanh.f32 %v2310_v45  ;;  %v2301_v32 = vadd.f32 %v5260_v22, %v5339_v6 }
 0x2d7   : > { %v5380_v10 = vpop.f32.mrb[15].mxu0  ;;  %v3769_v21 = vpop.eup %3768  ;;  %v2339_v15 = vadd.f32 1.0, %v3767_v44  ;;  %v2402_v46 = vmul.f32 0.5, %v2390_v5  ;;  %3782 = vtanh.f32 %v2401_v23  ;;  %v2391_v56 = vadd.f32 %v2379_v20, %v1888_v27 }
 0x2d8   : > { %v5384_v53 = vpop.f32.mrb[59].mxu1  ;;  %v3771_v24 = vpop.eup %3770  ;;  %v2350_v16 = vmul.f32 0.5, %v2338_v49  ;;  %v2382_v34 = vmul.f32 %v5152_v40, %v5233_v12  ;;  %3784 = vtanh.f32 %v2307_v33  ;;  %v2387_v50 = vadd.f32 %v5279_v13, %v2179_v17 }
 0x2d9   : > { %v3773_v57 = vpop.eup %3772  ;;  %v2351_v59 = vmul.f32 0.5, %v2339_v15  ;;  %v2204_v45 = vadd.f32 %v3044_v9, %v5158_v63  ;;  %3786 = vtanh.f32 %v2316_v38  ;;  %v2403_v6 = vmul.f32 0.5, %v2391_v56 }
 0x2da   : > { %v5390_v41 = vmul.f32 %v3769_v21, %v2350_v16  ;;  %v2421_v22 = vadd.f32 1.0, %v3773_v57  ;;  %v5392_v5 = vpop.f32.mrb[60].mxu1  ;;  %v2313_v27 = vmul.f32 0.5, %v2301_v32  ;;  %3788 = vtanh.f32 %v2402_v46 }
 0x2db   : > { %v5394_v39 = vmul.f32 %v3771_v24, %v2351_v59  ;;  %v2396_v20 = vadd.f32 %v5331_v60, %v2194_v1  ;;  %v5397_v18 = vpop.f32.mrb[61].mxu1  ;;  %v3775_v33 = vpop.eup %3774  ;;  %v5401_v13 = vmul.f32 %v5191_v11, %v5243_v30  ;;  %3790 = vtanh.f32 %v2403_v6 }
 0x2dc   : > { %v2433_v63 = vmul.f32 0.5, %v2421_v22  ;;  %v2392_v17 = vadd.f32 %v2380_v0, %v1890_v42  ;;  %v2422_v9 = vadd.f32 1.0, %v3775_v33  ;;  %v2399_v44 = vmul.f32 0.5, %v2387_v50  ;;  %v5718_v50 = vld [vmem:[#allocation39_spill] sm:$0xff] }
 0x2dd   : > { %v5404_v49 = vadd.f32 %v5150_v35, %v2198_v2  ;;  %v2394_v38 = vadd.f32 %v2382_v34, %v1894_v47  ;;  %v3777_v23 = vpop.eup %3776  ;;  %v2393_v60 = vadd.f32 %v5290_v51, %v2189_v29  ;;  %v5409_v15 = vadd.f32 %v3047_v61, %v5208_v55  ;;  %v5719_v33 = vld [vmem:[#allocation35_spill] sm:$0xff] }
 0x2de   : > { %v2549_v21 = vmul.f32 %v2433_v63, %v5161_v3  ;;  %v2404_v1 = vmul.f32 0.5, %v2392_v17  ;;  %v3053_v11 = vpop.f32.mrb[62].mxu1  ;;  %v5411_v32 = vpop.eup %3778  ;;  %3792 = vtanh.f32 %v2313_v27  ;;  %v2434_v42 = vmul.f32 0.5, %v2422_v9  ;;  %v5720_v17 = vld [vmem:[#allocation28_spill] sm:$0xff] }
 0x2df   : > { %v2424_v0 = vadd.f32 1.0, %v3777_v23  ;;  %v2408_v46 = vmul.f32 0.5, %v2396_v20  ;;  %v2228_v35 = vpop.f32.mrb[63].mxu1  ;;  %v2513_v2 = vadd.f32 1.0, %v5286_v19  ;;  %v5416_v3 = vmul.f32 %v5235_v52, %v5263_v8 }
 0x2e0   : > { %v2573_v51 = vadd.f32 %v5352_v4, %v2549_v21  ;;  %3794 = vtanh.f32 %v2404_v1  ;;  %v5419_v55 = vpop.eup %3780  ;;  %v2550_v29 = vmul.f32 %v2434_v42, %v5166_v36  ;;  %v2406_v61 = vmul.f32 0.5, %v2394_v38  ;;  %v5722_v21 = vld [vmem:[#allocation30_spill] sm:$0xff] }
 0x2e1   : > { %3796 = vtanh.f32 %v2399_v44  ;;  %v2436_v47 = vmul.f32 0.5, %v2424_v0  ;;  %v3783_v24 = vpop.eup %3782  ;;  %v2514_v16 = vadd.f32 1.0, %v5297_v28  ;;  %v2405_v19 = vmul.f32 0.5, %v2393_v60  ;;  %v5723_v60 = vld [vmem:[#allocation29_spill] sm:$0xff] }
 0x2e2   : > { %3798 = vtanh.f32 %v2573_v51  ;;  %2609 = vst [vmem:[%s4370_s1] sm:$0xff] %v2573_v51  ;;  %v2383_v52 = vmul.f32 %v5152_v40, %v5293_v62  ;;  %v3785_v56 = vpop.eup %3784  ;;  %v2574_v4 = vadd.f32 %v5355_v26, %v2550_v29  ;;  %v2425_v36 = vadd.f32 1.0, %v3783_v24 }
 0x2e3   : > { %v2552_v34 = vmul.f32 %v2436_v47, %v5172_v37  ;;  %3800 = vtanh.f32 %v2408_v46  ;;  %v5428_v57 = vpop.eup %3786  ;;  %v2525_v59 = vmul.f32 0.5, %v2513_v2  ;;  %v2516_v28 = vadd.f32 1.0, %v5304_v14  ;;  %v5721_v14 = vld [vmem:[#allocation27_spill] sm:$0xff]  ;;  %v5725_v47 = vld [vmem:[#allocation36_spill] sm:$0xff] }
 0x2e4   : > { %v2482_v22 = vadd.f32 %v5718_v50, %v2204_v45  ;;  %3802 = vtanh.f32 %v2406_v61  ;;  %v3789_v6 = vpop.eup %3788  ;;  %2610 = vst [vmem:[%s4370_s1 + $0x8] sm:$0xff] %v2574_v4  ;;  %v2437_v27 = vmul.f32 0.5, %v2425_v36  ;;  %v2395_v26 = vadd.f32 %v2383_v52, %v5380_v10 }
 0x2e5   : > { %3804 = vtanh.f32 %v2574_v4  ;;  %v2576_v40 = vadd.f32 %v5361_v54, %v2552_v34  ;;  %v3791_v37 = vpop.eup %3790  ;;  %v2526_v20 = vmul.f32 0.5, %v2514_v16  ;;  %v2517_v63 = vadd.f32 1.0, %v5719_v33  ;;  %v5727_v4 = vld [vmem:[#allocation38_spill] sm:$0xff]  ;;  %v5728_v34 = vld [vmem:[#allocation37_spill] sm:$0xff] }
 0x2e6   : > { %3806 = vtanh.f32 %v2405_v19  ;;  %v2209_v9 = vadd.f32 %v5720_v17, %v5384_v53  ;;  %v2553_v45 = vmul.f32 %v2437_v27, %v5721_v14  ;;  %v2427_v44 = vadd.f32 1.0, %v3791_v37  ;;  %v5724_v53 = vld [vmem:[#allocation34_spill] sm:$0xff]  ;;  %v5726_v19 = vld [vmem:[#allocation33_spill] sm:$0xff] }
 0x2e7   : > { %3808 = vtanh.f32 %v2576_v40  ;;  %2612 = vst [vmem:[%s4370_s1 + $0x18] sm:$0xff] %v2576_v40  ;;  %v2407_v38 = vmul.f32 0.5, %v2395_v26  ;;  %v2528_v23 = vmul.f32 0.5, %v2516_v28  ;;  %v2494_v54 = vmul.f32 0.5, %v2482_v22 }
 0x2e8   : > { %v2224_v10 = vadd.f32 %v5392_v5, %v5722_v21  ;;  %v2219_v1 = vadd.f32 %v5723_v60, %v5397_v18  ;;  %v3793_v42 = vpop.eup %3792  ;;  %v2577_v0 = vadd.f32 %v5368_v31, %v2553_v45  ;;  %v2439_v46 = vmul.f32 0.5, %v2427_v44  ;;  %v5729_v60 = vld [vmem:[#allocation31_spill] sm:$0xff] }
 0x2e9   : > { %3810 = vtanh.f32 %v2407_v38  ;;  %v2234_v2 = vadd.f32 %v3053_v11, %v5724_v53  ;;  %v5446_v29 = vmul.f32 0.5, %v2517_v63  ;;  %v5449_v61 = vadd.f32 1.0, %v5725_v47 }
 0x2ea   : > { %v3795_v51 = vpop.eup %3794  ;;  %v2426_v24 = vadd.f32 1.0, %v3789_v6  ;;  %3812 = vtanh.f32 %v2224_v10  ;;  %2613 = vst [vmem:[%s4370_s1 + $0x20] sm:$0xff] %v2577_v0  ;;  %v2555_v5 = vmul.f32 %v2439_v46, %v5189_v25  ;;  %v2229_v31 = vadd.f32 %v5726_v19, %v2228_v35  ;;  %v5730_v19 = vld [vmem:[#allocation32_spill] sm:$0xff] }
 0x2eb   : > { %v3797_v16 = vpop.eup %3796  ;;  %3814 = vtanh.f32 %v2577_v0  ;;  %v2428_v18 = vadd.f32 1.0, %v3795_v51  ;;  %v5455_v11 = vadd.f32 1.0, %v5727_v4  ;;  %v2479_v36 = vadd.f32 %v5728_v34, %v5404_v49 }
 0x2ec   : > { %v3799_v52 = vpop.eup %3798  ;;  %3816 = vtanh.f32 %v2494_v54  ;;  %v2488_v28 = vadd.f32 %v5416_v3, %v5409_v15  ;;  %v2579_v25 = vadd.f32 %v5374_v43, %v2555_v5  ;;  %v2334_v40 = vadd.f32 1.0, %v5419_v55 }
 0x2ed   : > { %v3801_v50 = vpop.eup %3800  ;;  %v2597_v22 = vmul.f32 %v3799_v52, %v2525_v59  ;;  %v2440_v6 = vmul.f32 0.5, %v2428_v18  ;;  %3818 = vtanh.f32 %v2219_v1  ;;  %v2331_v27 = vadd.f32 1.0, %v3785_v56 }
 0x2ee   : > { %v3803_v35 = vpop.eup %3802  ;;  %v2485_v26 = vadd.f32 %v5401_v13, %v2209_v9  ;;  %3820 = vtanh.f32 %v2234_v2  ;;  %v2438_v49 = vmul.f32 0.5, %v2426_v24  ;;  %2615 = vst [vmem:[%s4370_s1 + $0x30] sm:$0xff] %v2579_v25  ;;  %v2423_v33 = vadd.f32 1.0, %v3797_v16 }
 0x2ef   : > { %v3805_v37 = vpop.eup %3804  ;;  %2621 = vst [vmem:[%s4367_s13] sm:$0xff] %v2597_v22  ;;  %3822 = vtanh.f32 %v2579_v25  ;;  %v2556_v15 = vmul.f32 %v2440_v6, %v5196_v58  ;;  %v2430_v3 = vadd.f32 1.0, %v3803_v35  ;;  %v2491_v63 = vmul.f32 0.5, %v2479_v36 }
 0x2f0   : > { %v3807_v59 = vpop.eup %3806  ;;  %v2598_v43 = vmul.f32 %v3805_v37, %v2526_v20  ;;  %3824 = vtanh.f32 %v2229_v31  ;;  %v2432_v56 = vadd.f32 1.0, %v3801_v50  ;;  %v2500_v9 = vmul.f32 0.5, %v2488_v28 }
 0x2f1   : > { %v3809_v55 = vpop.eup %3808  ;;  %v2580_v13 = vadd.f32 %v5378_v7, %v2556_v15  ;;  %v2442_v17 = vmul.f32 0.5, %v2430_v3  ;;  %v2346_v14 = vmul.f32 0.5, %v2334_v40  ;;  %v2340_v45 = vadd.f32 1.0, %v5428_v57 }
 0x2f2   : > { %2622 = vst [vmem:[%s4367_s13 + $0x8] sm:$0xff] %v2598_v43  ;;  %v2600_v44 = vmul.f32 %v3809_v55, %v2528_v23  ;;  %v2497_v58 = vmul.f32 0.5, %v2485_v26  ;;  %v2337_v54 = vadd.f32 1.0, %v3793_v42  ;;  %v2429_v20 = vadd.f32 1.0, %v3807_v59 }
 0x2f3   : > { %v3811_v38 = vpop.eup %3810  ;;  %3826 = vtanh.f32 %v2580_v13  ;;  %2616 = vst [vmem:[%s4370_s1 + $0x38] sm:$0xff] %v2580_v13  ;;  %v2558_v21 = vmul.f32 %v2442_v17, %v5233_v12  ;;  %v2554_v1 = vmul.f32 %v2438_v49, %v5729_v60  ;;  %v2435_v7 = vmul.f32 0.5, %v2423_v33 }
 0x2f4   : > { %v3813_v10 = vpop.eup %3812  ;;  %2624 = vst [vmem:[%s4367_s13 + $0x18] sm:$0xff] %v2600_v44  ;;  %3828 = vtanh.f32 %v2491_v63  ;;  %v2431_v0 = vadd.f32 1.0, %v3811_v38  ;;  %v2444_v57 = vmul.f32 0.5, %v2432_v56  ;;  %v2343_v2 = vmul.f32 0.5, %v2331_v27 }
 0x2f5   : > { %v3815_v46 = vpop.eup %3814  ;;  %v2582_v23 = vadd.f32 %v5390_v41, %v2558_v21  ;;  %3830 = vtanh.f32 %v2500_v9  ;;  %v2566_v42 = vmul.f32 %v3813_v10, %v2346_v14  ;;  %v2352_v24 = vmul.f32 0.5, %v2340_v45 }
 0x2f6   : > { %v3817_v53 = vpop.eup %3816  ;;  %v2601_v51 = vmul.f32 %v3815_v46, %v5446_v29  ;;  %v2443_v12 = vmul.f32 0.5, %v2431_v0  ;;  %3832 = vtanh.f32 %v2497_v58  ;;  %v2441_v16 = vmul.f32 0.5, %v2429_v20 }
 0x2f7   : > { %v3819_v47 = vpop.eup %3818  ;;  %3834 = vtanh.f32 %v2582_v23  ;;  %2618 = vst [vmem:[%s4370_s1 + $0x48] sm:$0xff] %v2582_v23  ;;  %v2578_v5 = vadd.f32 %v2566_v42, %v2554_v1  ;;  %v2531_v41 = vmul.f32 0.5, %v5449_v61  ;;  %v2551_v31 = vmul.f32 %v2435_v7, %v5730_v19 }
 0x2f8   : > { %v3821_v18 = vpop.eup %3820  ;;  %2625 = vst [vmem:[%s4367_s13 + $0x20] sm:$0xff] %v2601_v51  ;;  %v2559_v52 = vmul.f32 %v2443_v12, %v5293_v62  ;;  %v2563_v29 = vmul.f32 %v3819_v47, %v2343_v2  ;;  %v2349_v34 = vmul.f32 0.5, %v2337_v54  ;;  %v2560_v36 = vmul.f32 %v2444_v57, %v5263_v8 }
 0x2f9   : > { %v3823_v4 = vpop.eup %3822  ;;  %3836 = vtanh.f32 %v2578_v5  ;;  %2614 = vst [vmem:[%s4370_s1 + $0x28] sm:$0xff] %v2578_v5  ;;  %v2572_v28 = vmul.f32 %v3821_v18, %v2352_v24  ;;  %v2557_v62 = vmul.f32 %v2441_v16, %v5243_v30  ;;  %v2532_v8 = vmul.f32 0.5, %v5455_v11 }
 0x2fa   : > { %v3825_v50 = vpop.eup %3824  ;;  %v2603_v61 = vmul.f32 %v3823_v4, %v2531_v41  ;;  %v2583_v22 = vadd.f32 %v5394_v39, %v2559_v52  ;;  %v2575_v25 = vadd.f32 %v2563_v29, %v2551_v31  ;;  %v2522_v40 = vadd.f32 1.0, %v5366_v48 }
 0x2fb   : > { %v2584_v6 = vadd.f32 %v2572_v28, %v2560_v36  ;;  %v2569_v35 = vmul.f32 %v3825_v50, %v2349_v34  ;;  %v2518_v48 = vadd.f32 1.0, %v3817_v53 }
 0x2fc   : > { %2627 = vst [vmem:[%s4367_s13 + $0x30] sm:$0xff] %v2603_v61  ;;  %3838 = vtanh.f32 %v2583_v22  ;;  %2619 = vst [vmem:[%s4370_s1 + $0x50] sm:$0xff] %v2583_v22  ;;  %v2534_v49 = vmul.f32 0.5, %v2522_v40 }
 0x2fd   : > { %2611 = vst [vmem:[%s4370_s1 + $0x10] sm:$0xff] %v2575_v25  ;;  %v3827_v27 = vpop.eup %3826  ;;  %3840 = vtanh.f32 %v2575_v25  ;;  %2620 = vst [vmem:[%s4370_s1 + $0x58] sm:$0xff] %v2584_v6  ;;  %v2581_v39 = vadd.f32 %v2569_v35, %v2557_v62 }
 0x2fe   : > { %v3829_v30 = vpop.eup %3828  ;;  %v2604_v11 = vmul.f32 %v3827_v27, %v2532_v8  ;;  %3842 = vtanh.f32 %v2584_v6 }
 0x2ff   : > { %v3831_v26 = vpop.eup %3830  ;;  %3844 = vtanh.f32 %v2581_v39  ;;  %2617 = vst [vmem:[%s4370_s1 + $0x40] sm:$0xff] %v2581_v39 }
 0x300   : > { %v3833_v37 = vpop.eup %3832  ;;  %2628 = vst [vmem:[%s4367_s13 + $0x38] sm:$0xff] %v2604_v11 }
 0x301   : > { %3969 = shalt.err (!%p3966_p5)
}
 0x302   : > { %s3970_s1 = scalar_lea.hbm %s5498_s27, 1536  ;;  %s3974_s6 = scalar_lea.hbm %s5603_s5, 3072 }
 0x303   : > { %p3971_p1 = scmp.ne.s32.totalorder %s5498_s27, %s3970_s1  ;;  %p3975_p9 = scmp.lt.u32.totalorder %s5498_s27, %s5603_s5 }
 0x304   : > { %p3976_p13 = scmp.lt.u32.totalorder %s3974_s6, %s3970_s1  ;;  %p3978_p3 = scmp.lt.u32.totalorder %s3970_s1, %s5498_s27 }
 0x305   : > { %p3972_p6 = pnand %p3971_p1, %p5731_p4 }
 0x306   : > { %p3977_p11 = por %p3976_p13, %p3975_p9 }
 0x307   : > { %p3973_p12 = pneg %p3972_p6 }
 0x308   : > { %p3979_p2 = por %p3978_p3, %p3977_p11 }
 0x30a   : > { %p3980_p7 = pnand %p3979_p2, %p3973_p12 }
 0x30c   : > { %3983 = shalt.err (!%p3980_p7)
}
 0x30d   : > { %s4101_s11 = smov 384   ;;  %s4102_s14 = smov 24   ;;  %v3835_v15 = vpop.eup %3834  ;;  %v2523_v3 = vadd.f32 1.0, %v5411_v32  ;;  %v2530_v59 = vmul.f32 0.5, %v2518_v48  ;;  %v2515_v43 = vadd.f32 1.0, %v3829_v30  ;;  %v2524_v55 = vadd.f32 1.0, %v3831_v26 }
 0x30e   : > { %3260 = dma.vmem_to_hbm [thread:$0]  (%p5731_p4), %s5500_s25, 1536, %s5498_s27, %s2639_s8, %s4101_s11, %s4101_s11, %s4102_s14   ;;  %v2606_v33 = vmul.f32 %v3835_v15, %v2534_v49  ;;  %v3837_v63 = vpop.eup %3836  ;;  %v2521_v56 = vadd.f32 1.0, %v3833_v37 }
 0x30f   : > { %v2602_v13 = vmul.f32 %v3837_v63, %v2530_v59  ;;  %v2535_v17 = vmul.f32 0.5, %v2523_v3  ;;  %v3839_v9 = vpop.eup %3838  ;;  %v2527_v14 = vmul.f32 0.5, %v2515_v43  ;;  %v2536_v32 = vmul.f32 0.5, %v2524_v55  ;;  %s2654_s25 = sshll.u32 %s4367_s13, 4  ;;  %s5542_s30 = scalar_lea.hbm %s5602_s4, %s3247_s12  ;;  %s5544_s25 = int_to_ptr.vmem [resolvable:$true] %s2654_s25 }
 0x310   : > { %2630 = vst [vmem:[%s4367_s13 + $0x48] sm:$0xff] %v2606_v33  ;;  %v3841_v45 = vpop.eup %3840  ;;  %v2533_v38 = vmul.f32 0.5, %v2521_v56  ;;  %s2634_s10 = scalar_lea.sflag [#allocation7], %s4344_s15  ;;  %s3984_s16 = scalar_lea.vmem %s5544_s25, 1536 }
 0x311   : > { %2626 = vst [vmem:[%s4367_s13 + $0x28] sm:$0xff] %v2602_v13  ;;  %v2607_v44 = vmul.f32 %v3839_v9, %v2535_v17  ;;  %v3843_v58 = vpop.eup %3842  ;;  %v2599_v54 = vmul.f32 %v3841_v45, %v2527_v14  ;;  %p3985_p10 = scmp.ne.s32.totalorder %s5544_s25, %s3984_s16  ;;  %s4103_s1 = smov [#allocation11]  }
 0x312   : > { %v3845_v20 = vpop.eup %3844  ;;  %v2608_v21 = vmul.f32 %v3843_v58, %v2536_v32  ;;  %s3988_s21 = sshll.u32 %s4103_s1, 4  ;;  %s3989_s21 = int_to_ptr.vmem [resolvable:$false] %s3988_s21 }
 0x313   : > { %2631 = vst [vmem:[%s4367_s13 + $0x50] sm:$0xff] %v2607_v44  ;;  %2623 = vst [vmem:[%s4367_s13 + $0x10] sm:$0xff] %v2599_v54  ;;  %v2605_v10 = vmul.f32 %v3845_v20, %v2533_v38  ;;  %p3986_p8 = pnand %p3985_p10, %p5731_p4  ;;  %s3990_s24 = scalar_lea.vmem %s3989_s21, 3072 }
 0x314   : > { %2632 = vst [vmem:[%s4367_s13 + $0x58] sm:$0xff] %v2608_v21  ;;  %p3991_p5 = scmp.lt.s32.totalorder %s5544_s25, %s3989_s21  ;;  %p3992_p1 = scmp.lt.s32.totalorder %s3990_s24, %s3984_s16 }
 0x315   : > { %2629 = vst [vmem:[%s4367_s13 + $0x40] sm:$0xff] %v2605_v10  ;;  %p3987_p0 = pneg %p3986_p8 }
 0x316   : > { %p3993_p6 = por %p3992_p1, %p3991_p5 }
 0x318   : > { %p3994_p12 = pnand %p3993_p6, %p3987_p0 }
 0x31a   : > { %3997 = shalt.err (!%p3994_p12)
}
 0x31b   : > { %s3998_s13 = scalar_lea.hbm %s5542_s30, 1536  ;;  %s4002_s6 = scalar_lea.hbm %s5602_s4, 3072 }
 0x31c   : > { %p3999_p9 = scmp.ne.s32.totalorder %s5542_s30, %s3998_s13  ;;  %p4003_p3 = scmp.lt.u32.totalorder %s5542_s30, %s5602_s4 }
 0x31d   : > { %p4004_p2 = scmp.lt.u32.totalorder %s4002_s6, %s3998_s13  ;;  %p4006_p10 = scmp.lt.u32.totalorder %s3998_s13, %s5542_s30 }
 0x31e   : > { %p4000_p13 = pnand %p3999_p9, %p5731_p4 }
 0x31f   : > { %p4005_p7 = por %p4004_p2, %p4003_p3 }
 0x320   : > { %p4001_p11 = pneg %p4000_p13 }
 0x321   : > { %p4007_p8 = por %p4006_p10, %p4005_p7 }
 0x323   : > { %p4008_p0 = pnand %p4007_p8, %p4001_p11 }
 0x325   : > { %4011 = shalt.err (!%p4008_p0)
}
 0x326   : > { %3259 = dma.vmem_to_hbm [thread:$0]  (%p5731_p4), %s5544_s25, 1536, %s5542_s30, %s2634_s10, %s4101_s11, %s4101_s11, %s4102_s14  }
 0x327 PF: > { %s5732_s27 = sld [smem:[#allocation26_spill]]  ;;  %s2687_s8 = sand.u32 1, %s4060_s18  }
 0x328   : > { %p5734_p1 = scmp.ge.s32.totalorder %s4080_s23, 2  ;;  %s2688_s16 = scalar_lea.sflag [#allocation7], %s2687_s8 }
 0x32d   : > { %p5733_p5 = scmp.ne.s32.totalorder %s5732_s27, 0 }
 0x32f   : > { %p3275_p6 = pnand %p5734_p1, %p5733_p5 }
 0x331   : > { %4051 = dma.done.wait (!%p3275_p6), %s2688_s16, 1536  }
 0x332   : > { %4053 = vsyncadd (!%p3275_p6), %s2688_s16, 4294965760  ;;  %s2697_s28 = scalar_lea.sflag [#allocation13], %s2687_s8 }
 0x333   : > { %4055 = dma.done.wait (!%p3275_p6), %s2697_s28, 1536  }
 0x334   : > { %4057 = vsyncadd (!%p3275_p6), %s2697_s28, 4294965760  ;;  %s24_s23 = sadd.s32 1, %s4080_s23   ;;  %s5735_s18 = smov %s4064_s19 }
 0x335   : > { %p21_p12 = scmp.ge.s32.totalorder %s24_s23, 4   ;;  %s5736_s19 = smov %s4068_s20 }
 0x336   : > { %s5737_s20 = smov %s4330_s7  ;;  %s5738_s21 = smov %s4076_s22 }
 0x337   : > { %s5739_s22 = smov %s5741_s17  ;;  %23 = sbr.rel (!%p21_p12) target bundleno = 10 (0xa), region = 126 }
 0x33e   :  { %2702 = vsyncpa [#allocation6], 1 }
 0x33f   :  { %2704 = vsyncpa [#allocation6 + $0x1], 1 }
 0x340   :  { %2705 = vsyncpa [#allocation9], 1 }
 0x341   :  { %2706 = vsyncpa [#allocation7], 1 }
 0x342   :  { %2708 = vsyncpa [#allocation7 + $0x1], 1 }
 0x343   :  { %2709 = vsyncpa [#allocation13], 1 }
 0x344   :  { %2711 = vsyncpa [#allocation13 + $0x1], 1 }
 0x345   :  { %2712 = vsyncmov [#allocation3] }
 0x348   :  { %s2713_s15 = vpop.sfrf %2712 }
 0x349   :  { %p2891_p4 = scmp.ne.s32.totalorder %s2713_s15, 0 }
 0x34b   :  { %2717 = shalt.err (%p2891_p4)  }
 0x34c   :  { %2719 = vsyncmov [#allocation3 + $0x1] }
 0x34f   :  { %s2720_s7 = vpop.sfrf %2719 }
 0x350   :  { %p2892_p9 = scmp.ne.s32.totalorder %s2720_s7, 0 }
 0x352   :  { %2724 = shalt.err (%p2892_p9)  }

</bundles_post_ra>
